<compile_context>
chip_gen: v5e
topology: v5e:2x2
jax: 0.10.0
libtpu: 0.0.40
codegen_flags: <defaults>
</compile_context>

<pallas_src>
import math

import jax
import jax.numpy as jnp
from jax.experimental import pallas as pl
from jax.experimental.pallas import tpu as pltpu

_BN_EPS = 1e-5
_SLOPE = 0.05            # initial_slope (PReLU init + kaiming gain)
_LANE = 128              # TPU lane width  (feature padding target)
_SUB = 8                 # TPU sublane width (batch padding target)
_DOWN_OFF = 64           # lane offset of the fused downsample / identity path
_NEG = -1e30             # class-lane mask folded into l3's bias (finite, f32-safe)


# ------------------------------- fused kernel ------------------------------- #
def _make_fused_kernel(plan, slope):
    """Builds the fully-fused forward kernel (closure over the static plan)."""

    def kernel(x_ref, w_ref, b_ref, out_ref):
        def matmul(h, idx):
            # bf16 MXU operands, f32 accumulate; bias add in f32.
            return (jnp.dot(h.astype(jnp.bfloat16), w_ref[idx],
                            preferred_element_type=jnp.float32)
                    + b_ref[idx])

        def prelu(z):
            return jnp.where(z > 0.0, z, slope * z)

        h = x_ref[...].astype(jnp.float32)
        # Hoisted lane predicate for fused w1+downsample blocks:
        # lanes [0,64) carry the w1 path (PReLU), lanes [64,128) the identity.
        w1_lane = (jax.lax.broadcasted_iota(jnp.int32, (h.shape[0], _LANE), 1)
                   < _DOWN_OFF)

        # Residual BasicBlocks (Dropout layers are identity in eval mode).
        for blk in plan["blocks"]:
            if blk["kind"] == "plain":
                a = prelu(matmul(h, blk["wa"]))
                h = prelu(matmul(a, blk["wb"]) + h)
            else:  # "down": w1 and downsample fused into one 128-lane matmul
                z = matmul(h, blk["wa"])
                c = jnp.where(w1_lane, prelu(z), z)
                h = prelu(matmul(c, blk["wb"]) + c)

        # Head (Dropout = identity).
        h = prelu(matmul(h, plan["l1"]))
        h = prelu(matmul(h, plan["l2"]))
        z = matmul(h, plan["l3"])          # padded class lanes biased to -1e30

        # Softmax over the real class lanes (model_type == 'PC').
        m = jnp.max(z, axis=-1, keepdims=True)
        e = jnp.exp(z - m)
        s = jnp.sum(e, axis=-1, keepdims=True)
        r = pl.reciprocal(s, approx=True)  # EUP slot
        r = r * (2.0 - s * r)              # one Newton step -> ~exact normalization
        out_ref[...] = e * r

    return kernel


# ------------------------------ parameter setup ----------------------------- #
def build_params(key, input_data_length, blocks_num, classes_num):
    assert input_data_length <= _DOWN_OFF, (
        "fused lane layout requires all feature widths <= 64 "
        "(wide-feature configs like the default 606 need multi-tile features)")
    keys = iter(jax.random.split(key, 512))

    Ws, Bs = [], []          # packed, lane-placed (128,128)/(1,128) layers
    ref_layers = []          # unpacked per-module weights for the reference

    def torch_linear(in_f, out_f, fold_bn=True):
        """torch nn.Linear init (kaiming_normal_(a=slope) weight, uniform bias)
        + eval-mode BatchNorm1d (fresh running stats) folded in.  Weights are
        rounded to bf16 (the kernel's MXU operand dtype)."""
        kw, kb = next(keys), next(keys)
        std = math.sqrt(2.0 / (1.0 + _SLOPE * _SLOPE)) / math.sqrt(in_f)
        w = std * jax.random.normal(kw, (out_f, in_f), jnp.float32)   # (out,in)
        bound = 1.0 / math.sqrt(in_f)
        b = jax.random.uniform(kb, (out_f,), jnp.float32, -bound, bound)
        wt = w.T                                                      # (in,out)
        if fold_bn:
            s = 1.0 / math.sqrt(1.0 + _BN_EPS)   # gamma=1, beta=0, mean=0, var=1
            wt = wt * s
            b = b * s
        wt = wt.astype(jnp.bfloat16).astype(jnp.float32)   # bf16 weight values
        return wt, b

    def pack(entries, bias_fill=0.0):
        """Place (wt, b, in_off, out_off) sub-layers into one (128,128) weight
        slab and one (1,128) bias row."""
        wp = jnp.zeros((_LANE, _LANE), jnp.float32)
        bp = jnp.full((1, _LANE), bias_fill, jnp.float32)
        for wt, b, in_off, out_off in entries:
            in_f, out_f = wt.shape
            wp = wp.at[in_off:in_off + in_f, out_off:out_off + out_f].set(wt)
            bp = bp.at[0, out_off:out_off + out_f].set(b)
        idx = len(Ws)
        Ws.append(wp)
        Bs.append(bp)
        return idx

    blocks = []
    off = 0                              # lane offset of the live features
    in_f = input_data_length
    out_f = int(2 ** math.ceil(math.log(input_data_length) / math.log(2.0)))

    for g in range(blocks_num):
        if g > 0:
            in_f = out_f
            out_f = out_f // 2
        # rnb1, rnb2: in_f -> in_f, no downsample.
        for _ in range(2):
            w1, b1 = torch_linear(in_f, in_f)
            w2, b2 = torch_linear(in_f, in_f)
            blocks.append(dict(
                kind="plain",
                wa=pack([(w1, b1, off, 0)]),        # 'a' lives at lanes [0,in_f)
                wb=pack([(w2, b2, 0, off)]),        # output aligned with identity
            ))
            ref_layers.append(("block", (w1, b1), (w2, b2), None))
        # rnb3: in_f -> out_f with downsample; fuse w1 + downsample matmuls.
        w1, b1 = torch_linear(in_f, out_f)
        w2, b2 = torch_linear(out_f, out_f)
        wd, bd = torch_linear(in_f, out_f)
        blocks.append(dict(
            kind="down",
            wa=pack([(w1, b1, off, 0), (wd, bd, off, _DOWN_OFF)]),
            wb=pack([(w2, b2, 0, _DOWN_OFF)]),
        ))
        ref_layers.append(("block", (w1, b1), (w2, b2), (wd, bd)))
        off = _DOWN_OFF                  # live features now at lanes [64,64+out_f)

    # Head: Linear+BN+PReLU x2, then the 'PC' classifier.
    w, b = torch_linear(out_f, 64)
    l1 = pack([(w, b, off, 0)])
    ref_layers.append(("prelu_linear", (w, b)))
    w, b = torch_linear(64, 16)
    l2 = pack([(w, b, 0, 0)])
    ref_layers.append(("prelu_linear", (w, b)))
    w, b = torch_linear(16, classes_num, fold_bn=False)
    l3 = pack([(w, b, 0, 0)], bias_fill=_NEG)   # class-lane mask folded into bias
    ref_layers.append(("linear", (w, b)))

    plan = dict(blocks=blocks, l1=l1, l2=l2, l3=l3)
    return dict(
        plan=plan,
        W=jnp.stack(Ws).astype(jnp.bfloat16),   # (L,128,128) bf16 MXU operands
        B=jnp.stack(Bs),                        # (L,1,128)   f32 biases
        ref_layers=ref_layers,
        classes_num=classes_num)


# ------------------------------ batch tile choice ---------------------------- #
def _pick_batch_tile(pb):
    """pb is a multiple of 8.  Pick the largest tile <= 128 that divides pb
    exactly (no wasted rows); when pb >= 16 also keep >= 2 grid programs so
    v7x's two TensorCores both get work.  f32 activations cap the tile at 128
    (3 live (bt,128) f32 tiles stay within the 64-vreg budget); a bf16
    resident-activation variant could raise this to 256 on v6e/v7x."""
    cap = min(pb, 128)
    if pb >= 16:
        cap = min(cap, pb // 2)
    bt = _SUB
    for cand in range(_SUB, cap + 1, _SUB):
        if pb % cand == 0:
            bt = cand
    return bt


# --------------------------------- forward ---------------------------------- #
def forward(params, x):
    plan, W, B = params["plan"], params["W"], params["B"]
    classes_num = params["classes_num"]
    batch, in_f = x.shape

    pb = -(-batch // _SUB) * _SUB                    # pad batch to sublane multiple
    bt = _pick_batch_tile(pb)
    xp = jnp.zeros((pb, _LANE), jnp.float32).at[:batch, :in_f].set(
        x.astype(jnp.float32))

    L = W.shape[0]
    kernel = _make_fused_kernel(plan, _SLOPE)
    act_spec = pl.BlockSpec((bt, _LANE), lambda i: (i, 0))

    cost = pl.CostEstimate(
        flops=2 * L * _LANE * _LANE * pb,
        transcendentals=pb * _LANE,
        bytes_accessed=W.nbytes + B.nbytes + 2 * pb * _LANE * 4)

    # VMEM budget: weights (worst-case double buffered) + biases +
    # double-buffered activation in/out tiles + generous slack, capped to v7x.
    vmem_bytes = int(min(2 * W.nbytes + B.nbytes + 4 * bt * _LANE * 4 + (16 << 20),
                         64 << 20))
    cparams = pltpu.CompilerParams(
        dimension_semantics=("parallel",),           # batch tiles shard across TCs
        vmem_limit_bytes=vmem_bytes)

    def run(single_buffer_weights):
        kw = dict(pipeline_mode=pl.Buffered(1)) if single_buffer_weights else {}
        w_spec = pl.BlockSpec((L, _LANE, _LANE), lambda i: (0, 0, 0), **kw)
        b_spec = pl.BlockSpec((L, 1, _LANE), lambda i: (0, 0, 0), **kw)
        return pl.pallas_call(
            kernel,
            out_shape=jax.ShapeDtypeStruct((pb, _LANE), jnp.float32),
            grid=(pb // bt,),
            in_specs=[act_spec, w_spec, b_spec],
            out_specs=act_spec,
            compiler_params=cparams,
            cost_estimate=cost,
        )(xp, W, B)

    try:
        # Weights/biases are grid-invariant: single-buffer them.
        out = run(True)
    except Exception:
        # Fallback for JAX builds that reject single buffering.
        out = run(False)
    return out[:batch, :classes_num]


# ------------------------------ pure-JAX reference --------------------------- #
def reference_forward(params, x):
    def prelu(z):
        return jnp.where(z > 0.0, z, _SLOPE * z)

    def dot(a, b):
        return jnp.dot(a, b, precision=jax.lax.Precision.HIGHEST)

    h = x.astype(jnp.float32)
    z = None
    for entry in params["ref_layers"]:
        kind = entry[0]
        if kind == "block":
            (w1, b1), (w2, b2), down = entry[1], entry[2], entry[3]
            a = prelu(dot(h, w1) + b1)
            idn = dot(h, down[0]) + down[1] if down is not None else h
            h = prelu(dot(a, w2) + b2 + idn)
        elif kind == "prelu_linear":
            w, b = entry[1]
            h = prelu(dot(h, w) + b)
        else:                                         # final classifier
            w, b = entry[1]
            z = dot(h, w) + b
    return jax.nn.softmax(z, axis=-1)


# ----------------------------------- main ------------------------------------ #
if __name__ == "__main__":
    key = jax.random.PRNGKey(0)
    k_params, k_x = jax.random.split(key)

    batch = 4
    input_data_length = 48      # next pow2 -> 64, halves to 32 in the 2nd group
    blocks_num = 2
    classes_num = 9             # args.model_type == 'PC'

    params = build_params(k_params, input_data_length, blocks_num, classes_num)
    x = jax.random.normal(k_x, (batch, input_data_length), jnp.float32)

    y = jax.block_until_ready(forward(params, x))

    assert y.shape == (batch, classes_num), y.shape
    assert bool(jnp.all(jnp.isfinite(y)))
    # Newton-refined reciprocal -> rows sum to ~1 at f32 accuracy.
    assert bool(jnp.allclose(jnp.sum(y, axis=-1), 1.0, atol=1e-3))

    # Correctness vs. pure-JAX reference (same bf16-rounded weights, f32 math;
    # remaining delta is the bf16 activation rounding at each matmul operand).
    y_ref = reference_forward(params, x)
    assert bool(jnp.allclose(y, y_ref, atol=2e-2, rtol=2e-2)), (y, y_ref)

    print("KERNEL_OK")
</pallas_src>

<mosaic_0001>
module attributes {stable_mosaic.version = 11 : i64} {
  func.func @kernel(%arg0: i32, %arg1: memref<8x128xf32, #tpu.memory_space<vmem>>, %arg2: memref<15x128x128xbf16, #tpu.memory_space<vmem>>, %arg3: memref<15x1x128xf32, #tpu.memory_space<vmem>>, %arg4: memref<8x128xf32, #tpu.memory_space<vmem>>) attributes {dimension_semantics = [#tpu.dimension_semantics<parallel>], iteration_bounds = array<i64: 1>, scalar_prefetch = 0 : i64, scratch_operands = 0 : i64, tpu.core_type = #tpu.core_type<tc>, window_params = [{transform_indices = @transform_0, window_bounds = array<i64: 8, 128>}, {pipeline_mode = #tpu.pipeline_mode<synchronous>, transform_indices = @transform_1, window_bounds = array<i64: 15, 128, 128>}, {pipeline_mode = #tpu.pipeline_mode<synchronous>, transform_indices = @transform_2, window_bounds = array<i64: 15, 1, 128>}, {transform_indices = @transform_3, window_bounds = array<i64: 8, 128>}]} {
    %c0 = arith.constant 0 : index
    %c0_0 = arith.constant 0 : index
    %0 = vector.load %arg1[%c0, %c0_0] : memref<8x128xf32, #tpu.memory_space<vmem>>, vector<8x128xf32>
    %1 = tpu.iota {dimensions = array<i32: 1>} : vector<8x128xi32>
    %c64_i32 = arith.constant 64 : i32
    %2 = vector.broadcast %c64_i32 : i32 to vector<8x128xi32>
    %3 = arith.cmpi slt, %1, %2 : vector<8x128xi32>
    %4 = arith.truncf %0 : vector<8x128xf32> to vector<8x128xbf16>
    %c0_1 = arith.constant 0 : index
    %c0_2 = arith.constant 0 : index
    %c0_3 = arith.constant 0 : index
    %5 = vector.load %arg2[%c0_1, %c0_2, %c0_3] : memref<15x128x128xbf16, #tpu.memory_space<vmem>>, vector<1x128x128xbf16>
    %6 = vector.shape_cast %5 : vector<1x128x128xbf16> to vector<128x128xbf16>
    %cst = arith.constant dense<0.000000e+00> : vector<8x128xf32>
    %7 = tpu.matmul %4, %6, %cst {dimension_numbers = #tpu.dot_dimension_numbers<[1], [0], [0], [1], [0, 0, 1, 1], [], []>} : vector<8x128xbf16>, vector<128x128xbf16>, vector<8x128xf32> -> vector<8x128xf32>
    %c0_4 = arith.constant 0 : index
    %c0_5 = arith.constant 0 : index
    %c0_6 = arith.constant 0 : index
    %8 = vector.load %arg3[%c0_4, %c0_5, %c0_6] : memref<15x1x128xf32, #tpu.memory_space<vmem>>, vector<1x1x128xf32>
    %9 = vector.shape_cast %8 : vector<1x1x128xf32> to vector<1x128xf32>
    %10 = vector.broadcast %9 : vector<1x128xf32> to vector<8x128xf32>
    %11 = arith.addf %7, %10 : vector<8x128xf32>
    %cst_7 = arith.constant 0.000000e+00 : f32
    %12 = vector.broadcast %cst_7 : f32 to vector<8x128xf32>
    %13 = arith.cmpf ogt, %11, %12 : vector<8x128xf32>
    %cst_8 = arith.constant 5.000000e-02 : f32
    %14 = vector.broadcast %cst_8 : f32 to vector<8x128xf32>
    %15 = arith.mulf %14, %11 : vector<8x128xf32>
    %16 = arith.select %13, %11, %15 : vector<8x128xi1>, vector<8x128xf32>
    %17 = arith.truncf %16 : vector<8x128xf32> to vector<8x128xbf16>
    %c1 = arith.constant 1 : index
    %c0_9 = arith.constant 0 : index
    %c0_10 = arith.constant 0 : index
    %18 = vector.load %arg2[%c1, %c0_9, %c0_10] : memref<15x128x128xbf16, #tpu.memory_space<vmem>>, vector<1x128x128xbf16>
    %19 = vector.shape_cast %18 : vector<1x128x128xbf16> to vector<128x128xbf16>
    %cst_11 = arith.constant dense<0.000000e+00> : vector<8x128xf32>
    %20 = tpu.matmul %17, %19, %cst_11 {dimension_numbers = #tpu.dot_dimension_numbers<[1], [0], [0], [1], [0, 0, 1, 1], [], []>} : vector<8x128xbf16>, vector<128x128xbf16>, vector<8x128xf32> -> vector<8x128xf32>
    %c1_12 = arith.constant 1 : index
    %c0_13 = arith.constant 0 : index
    %c0_14 = arith.constant 0 : index
    %21 = vector.load %arg3[%c1_12, %c0_13, %c0_14] : memref<15x1x128xf32, #tpu.memory_space<vmem>>, vector<1x1x128xf32>
    %22 = vector.shape_cast %21 : vector<1x1x128xf32> to vector<1x128xf32>
    %23 = vector.broadcast %22 : vector<1x128xf32> to vector<8x128xf32>
    %24 = arith.addf %20, %23 : vector<8x128xf32>
    %25 = arith.addf %24, %0 : vector<8x128xf32>
    %cst_15 = arith.constant 0.000000e+00 : f32
    %26 = vector.broadcast %cst_15 : f32 to vector<8x128xf32>
    %27 = arith.cmpf ogt, %25, %26 : vector<8x128xf32>
    %cst_16 = arith.constant 5.000000e-02 : f32
    %28 = vector.broadcast %cst_16 : f32 to vector<8x128xf32>
    %29 = arith.mulf %28, %25 : vector<8x128xf32>
    %30 = arith.select %27, %25, %29 : vector<8x128xi1>, vector<8x128xf32>
    %31 = arith.truncf %30 : vector<8x128xf32> to vector<8x128xbf16>
    %c2 = arith.constant 2 : index
    %c0_17 = arith.constant 0 : index
    %c0_18 = arith.constant 0 : index
    %32 = vector.load %arg2[%c2, %c0_17, %c0_18] : memref<15x128x128xbf16, #tpu.memory_space<vmem>>, vector<1x128x128xbf16>
    %33 = vector.shape_cast %32 : vector<1x128x128xbf16> to vector<128x128xbf16>
    %cst_19 = arith.constant dense<0.000000e+00> : vector<8x128xf32>
    %34 = tpu.matmul %31, %33, %cst_19 {dimension_numbers = #tpu.dot_dimension_numbers<[1], [0], [0], [1], [0, 0, 1, 1], [], []>} : vector<8x128xbf16>, vector<128x128xbf16>, vector<8x128xf32> -> vector<8x128xf32>
    %c2_20 = arith.constant 2 : index
    %c0_21 = arith.constant 0 : index
    %c0_22 = arith.constant 0 : index
    %35 = vector.load %arg3[%c2_20, %c0_21, %c0_22] : memref<15x1x128xf32, #tpu.memory_space<vmem>>, vector<1x1x128xf32>
    %36 = vector.shape_cast %35 : vector<1x1x128xf32> to vector<1x128xf32>
    %37 = vector.broadcast %36 : vector<1x128xf32> to vector<8x128xf32>
    %38 = arith.addf %34, %37 : vector<8x128xf32>
    %cst_23 = arith.constant 0.000000e+00 : f32
    %39 = vector.broadcast %cst_23 : f32 to vector<8x128xf32>
    %40 = arith.cmpf ogt, %38, %39 : vector<8x128xf32>
    %cst_24 = arith.constant 5.000000e-02 : f32
    %41 = vector.broadcast %cst_24 : f32 to vector<8x128xf32>
    %42 = arith.mulf %41, %38 : vector<8x128xf32>
    %43 = arith.select %40, %38, %42 : vector<8x128xi1>, vector<8x128xf32>
    %44 = arith.truncf %43 : vector<8x128xf32> to vector<8x128xbf16>
    %c3 = arith.constant 3 : index
    %c0_25 = arith.constant 0 : index
    %c0_26 = arith.constant 0 : index
    %45 = vector.load %arg2[%c3, %c0_25, %c0_26] : memref<15x128x128xbf16, #tpu.memory_space<vmem>>, vector<1x128x128xbf16>
    %46 = vector.shape_cast %45 : vector<1x128x128xbf16> to vector<128x128xbf16>
    %cst_27 = arith.constant dense<0.000000e+00> : vector<8x128xf32>
    %47 = tpu.matmul %44, %46, %cst_27 {dimension_numbers = #tpu.dot_dimension_numbers<[1], [0], [0], [1], [0, 0, 1, 1], [], []>} : vector<8x128xbf16>, vector<128x128xbf16>, vector<8x128xf32> -> vector<8x128xf32>
    %c3_28 = arith.constant 3 : index
    %c0_29 = arith.constant 0 : index
    %c0_30 = arith.constant 0 : index
    %48 = vector.load %arg3[%c3_28, %c0_29, %c0_30] : memref<15x1x128xf32, #tpu.memory_space<vmem>>, vector<1x1x128xf32>
    %49 = vector.shape_cast %48 : vector<1x1x128xf32> to vector<1x128xf32>
    %50 = vector.broadcast %49 : vector<1x128xf32> to vector<8x128xf32>
    %51 = arith.addf %47, %50 : vector<8x128xf32>
    %52 = arith.addf %51, %30 : vector<8x128xf32>
    %cst_31 = arith.constant 0.000000e+00 : f32
    %53 = vector.broadcast %cst_31 : f32 to vector<8x128xf32>
    %54 = arith.cmpf ogt, %52, %53 : vector<8x128xf32>
    %cst_32 = arith.constant 5.000000e-02 : f32
    %55 = vector.broadcast %cst_32 : f32 to vector<8x128xf32>
    %56 = arith.mulf %55, %52 : vector<8x128xf32>
    %57 = arith.select %54, %52, %56 : vector<8x128xi1>, vector<8x128xf32>
    %58 = arith.truncf %57 : vector<8x128xf32> to vector<8x128xbf16>
    %c4 = arith.constant 4 : index
    %c0_33 = arith.constant 0 : index
    %c0_34 = arith.constant 0 : index
    %59 = vector.load %arg2[%c4, %c0_33, %c0_34] : memref<15x128x128xbf16, #tpu.memory_space<vmem>>, vector<1x128x128xbf16>
    %60 = vector.shape_cast %59 : vector<1x128x128xbf16> to vector<128x128xbf16>
    %cst_35 = arith.constant dense<0.000000e+00> : vector<8x128xf32>
    %61 = tpu.matmul %58, %60, %cst_35 {dimension_numbers = #tpu.dot_dimension_numbers<[1], [0], [0], [1], [0, 0, 1, 1], [], []>} : vector<8x128xbf16>, vector<128x128xbf16>, vector<8x128xf32> -> vector<8x128xf32>
    %c4_36 = arith.constant 4 : index
    %c0_37 = arith.constant 0 : index
    %c0_38 = arith.constant 0 : index
    %62 = vector.load %arg3[%c4_36, %c0_37, %c0_38] : memref<15x1x128xf32, #tpu.memory_space<vmem>>, vector<1x1x128xf32>
    %63 = vector.shape_cast %62 : vector<1x1x128xf32> to vector<1x128xf32>
    %64 = vector.broadcast %63 : vector<1x128xf32> to vector<8x128xf32>
    %65 = arith.addf %61, %64 : vector<8x128xf32>
    %cst_39 = arith.constant 0.000000e+00 : f32
    %66 = vector.broadcast %cst_39 : f32 to vector<8x128xf32>
    %67 = arith.cmpf ogt, %65, %66 : vector<8x128xf32>
    %cst_40 = arith.constant 5.000000e-02 : f32
    %68 = vector.broadcast %cst_40 : f32 to vector<8x128xf32>
    %69 = arith.mulf %68, %65 : vector<8x128xf32>
    %70 = arith.select %67, %65, %69 : vector<8x128xi1>, vector<8x128xf32>
    %71 = arith.select %3, %70, %65 : vector<8x128xi1>, vector<8x128xf32>
    %72 = arith.truncf %71 : vector<8x128xf32> to vector<8x128xbf16>
    %c5 = arith.constant 5 : index
    %c0_41 = arith.constant 0 : index
    %c0_42 = arith.constant 0 : index
    %73 = vector.load %arg2[%c5, %c0_41, %c0_42] : memref<15x128x128xbf16, #tpu.memory_space<vmem>>, vector<1x128x128xbf16>
    %74 = vector.shape_cast %73 : vector<1x128x128xbf16> to vector<128x128xbf16>
    %cst_43 = arith.constant dense<0.000000e+00> : vector<8x128xf32>
    %75 = tpu.matmul %72, %74, %cst_43 {dimension_numbers = #tpu.dot_dimension_numbers<[1], [0], [0], [1], [0, 0, 1, 1], [], []>} : vector<8x128xbf16>, vector<128x128xbf16>, vector<8x128xf32> -> vector<8x128xf32>
    %c5_44 = arith.constant 5 : index
    %c0_45 = arith.constant 0 : index
    %c0_46 = arith.constant 0 : index
    %76 = vector.load %arg3[%c5_44, %c0_45, %c0_46] : memref<15x1x128xf32, #tpu.memory_space<vmem>>, vector<1x1x128xf32>
    %77 = vector.shape_cast %76 : vector<1x1x128xf32> to vector<1x128xf32>
    %78 = vector.broadcast %77 : vector<1x128xf32> to vector<8x128xf32>
    %79 = arith.addf %75, %78 : vector<8x128xf32>
    %80 = arith.addf %79, %71 : vector<8x128xf32>
    %cst_47 = arith.constant 0.000000e+00 : f32
    %81 = vector.broadcast %cst_47 : f32 to vector<8x128xf32>
    %82 = arith.cmpf ogt, %80, %81 : vector<8x128xf32>
    %cst_48 = arith.constant 5.000000e-02 : f32
    %83 = vector.broadcast %cst_48 : f32 to vector<8x128xf32>
    %84 = arith.mulf %83, %80 : vector<8x128xf32>
    %85 = arith.select %82, %80, %84 : vector<8x128xi1>, vector<8x128xf32>
    %86 = arith.truncf %85 : vector<8x128xf32> to vector<8x128xbf16>
    %c6 = arith.constant 6 : index
    %c0_49 = arith.constant 0 : index
    %c0_50 = arith.constant 0 : index
    %87 = vector.load %arg2[%c6, %c0_49, %c0_50] : memref<15x128x128xbf16, #tpu.memory_space<vmem>>, vector<1x128x128xbf16>
    %88 = vector.shape_cast %87 : vector<1x128x128xbf16> to vector<128x128xbf16>
    %cst_51 = arith.constant dense<0.000000e+00> : vector<8x128xf32>
    %89 = tpu.matmul %86, %88, %cst_51 {dimension_numbers = #tpu.dot_dimension_numbers<[1], [0], [0], [1], [0, 0, 1, 1], [], []>} : vector<8x128xbf16>, vector<128x128xbf16>, vector<8x128xf32> -> vector<8x128xf32>
    %c6_52 = arith.constant 6 : index
    %c0_53 = arith.constant 0 : index
    %c0_54 = arith.constant 0 : index
    %90 = vector.load %arg3[%c6_52, %c0_53, %c0_54] : memref<15x1x128xf32, #tpu.memory_space<vmem>>, vector<1x1x128xf32>
    %91 = vector.shape_cast %90 : vector<1x1x128xf32> to vector<1x128xf32>
    %92 = vector.broadcast %91 : vector<1x128xf32> to vector<8x128xf32>
    %93 = arith.addf %89, %92 : vector<8x128xf32>
    %cst_55 = arith.constant 0.000000e+00 : f32
    %94 = vector.broadcast %cst_55 : f32 to vector<8x128xf32>
    %95 = arith.cmpf ogt, %93, %94 : vector<8x128xf32>
    %cst_56 = arith.constant 5.000000e-02 : f32
    %96 = vector.broadcast %cst_56 : f32 to vector<8x128xf32>
    %97 = arith.mulf %96, %93 : vector<8x128xf32>
    %98 = arith.select %95, %93, %97 : vector<8x128xi1>, vector<8x128xf32>
    %99 = arith.truncf %98 : vector<8x128xf32> to vector<8x128xbf16>
    %c7 = arith.constant 7 : index
    %c0_57 = arith.constant 0 : index
    %c0_58 = arith.constant 0 : index
    %100 = vector.load %arg2[%c7, %c0_57, %c0_58] : memref<15x128x128xbf16, #tpu.memory_space<vmem>>, vector<1x128x128xbf16>
    %101 = vector.shape_cast %100 : vector<1x128x128xbf16> to vector<128x128xbf16>
    %cst_59 = arith.constant dense<0.000000e+00> : vector<8x128xf32>
    %102 = tpu.matmul %99, %101, %cst_59 {dimension_numbers = #tpu.dot_dimension_numbers<[1], [0], [0], [1], [0, 0, 1, 1], [], []>} : vector<8x128xbf16>, vector<128x128xbf16>, vector<8x128xf32> -> vector<8x128xf32>
    %c7_60 = arith.constant 7 : index
    %c0_61 = arith.constant 0 : index
    %c0_62 = arith.constant 0 : index
    %103 = vector.load %arg3[%c7_60, %c0_61, %c0_62] : memref<15x1x128xf32, #tpu.memory_space<vmem>>, vector<1x1x128xf32>
    %104 = vector.shape_cast %103 : vector<1x1x128xf32> to vector<1x128xf32>
    %105 = vector.broadcast %104 : vector<1x128xf32> to vector<8x128xf32>
    %106 = arith.addf %102, %105 : vector<8x128xf32>
    %107 = arith.addf %106, %85 : vector<8x128xf32>
    %cst_63 = arith.constant 0.000000e+00 : f32
    %108 = vector.broadcast %cst_63 : f32 to vector<8x128xf32>
    %109 = arith.cmpf ogt, %107, %108 : vector<8x128xf32>
    %cst_64 = arith.constant 5.000000e-02 : f32
    %110 = vector.broadcast %cst_64 : f32 to vector<8x128xf32>
    %111 = arith.mulf %110, %107 : vector<8x128xf32>
    %112 = arith.select %109, %107, %111 : vector<8x128xi1>, vector<8x128xf32>
    %113 = arith.truncf %112 : vector<8x128xf32> to vector<8x128xbf16>
    %c8 = arith.constant 8 : index
    %c0_65 = arith.constant 0 : index
    %c0_66 = arith.constant 0 : index
    %114 = vector.load %arg2[%c8, %c0_65, %c0_66] : memref<15x128x128xbf16, #tpu.memory_space<vmem>>, vector<1x128x128xbf16>
    %115 = vector.shape_cast %114 : vector<1x128x128xbf16> to vector<128x128xbf16>
    %cst_67 = arith.constant dense<0.000000e+00> : vector<8x128xf32>
    %116 = tpu.matmul %113, %115, %cst_67 {dimension_numbers = #tpu.dot_dimension_numbers<[1], [0], [0], [1], [0, 0, 1, 1], [], []>} : vector<8x128xbf16>, vector<128x128xbf16>, vector<8x128xf32> -> vector<8x128xf32>
    %c8_68 = arith.constant 8 : index
    %c0_69 = arith.constant 0 : index
    %c0_70 = arith.constant 0 : index
    %117 = vector.load %arg3[%c8_68, %c0_69, %c0_70] : memref<15x1x128xf32, #tpu.memory_space<vmem>>, vector<1x1x128xf32>
    %118 = vector.shape_cast %117 : vector<1x1x128xf32> to vector<1x128xf32>
    %119 = vector.broadcast %118 : vector<1x128xf32> to vector<8x128xf32>
    %120 = arith.addf %116, %119 : vector<8x128xf32>
    %cst_71 = arith.constant 0.000000e+00 : f32
    %121 = vector.broadcast %cst_71 : f32 to vector<8x128xf32>
    %122 = arith.cmpf ogt, %120, %121 : vector<8x128xf32>
    %cst_72 = arith.constant 5.000000e-02 : f32
    %123 = vector.broadcast %cst_72 : f32 to vector<8x128xf32>
    %124 = arith.mulf %123, %120 : vector<8x128xf32>
    %125 = arith.select %122, %120, %124 : vector<8x128xi1>, vector<8x128xf32>
    %126 = arith.truncf %125 : vector<8x128xf32> to vector<8x128xbf16>
    %c9 = arith.constant 9 : index
    %c0_73 = arith.constant 0 : index
    %c0_74 = arith.constant 0 : index
    %127 = vector.load %arg2[%c9, %c0_73, %c0_74] : memref<15x128x128xbf16, #tpu.memory_space<vmem>>, vector<1x128x128xbf16>
    %128 = vector.shape_cast %127 : vector<1x128x128xbf16> to vector<128x128xbf16>
    %cst_75 = arith.constant dense<0.000000e+00> : vector<8x128xf32>
    %129 = tpu.matmul %126, %128, %cst_75 {dimension_numbers = #tpu.dot_dimension_numbers<[1], [0], [0], [1], [0, 0, 1, 1], [], []>} : vector<8x128xbf16>, vector<128x128xbf16>, vector<8x128xf32> -> vector<8x128xf32>
    %c9_76 = arith.constant 9 : index
    %c0_77 = arith.constant 0 : index
    %c0_78 = arith.constant 0 : index
    %130 = vector.load %arg3[%c9_76, %c0_77, %c0_78] : memref<15x1x128xf32, #tpu.memory_space<vmem>>, vector<1x1x128xf32>
    %131 = vector.shape_cast %130 : vector<1x1x128xf32> to vector<1x128xf32>
    %132 = vector.broadcast %131 : vector<1x128xf32> to vector<8x128xf32>
    %133 = arith.addf %129, %132 : vector<8x128xf32>
    %134 = arith.addf %133, %112 : vector<8x128xf32>
    %cst_79 = arith.constant 0.000000e+00 : f32
    %135 = vector.broadcast %cst_79 : f32 to vector<8x128xf32>
    %136 = arith.cmpf ogt, %134, %135 : vector<8x128xf32>
    %cst_80 = arith.constant 5.000000e-02 : f32
    %137 = vector.broadcast %cst_80 : f32 to vector<8x128xf32>
    %138 = arith.mulf %137, %134 : vector<8x128xf32>
    %139 = arith.select %136, %134, %138 : vector<8x128xi1>, vector<8x128xf32>
    %140 = arith.truncf %139 : vector<8x128xf32> to vector<8x128xbf16>
    %c10 = arith.constant 10 : index
    %c0_81 = arith.constant 0 : index
    %c0_82 = arith.constant 0 : index
    %141 = vector.load %arg2[%c10, %c0_81, %c0_82] : memref<15x128x128xbf16, #tpu.memory_space<vmem>>, vector<1x128x128xbf16>
    %142 = vector.shape_cast %141 : vector<1x128x128xbf16> to vector<128x128xbf16>
    %cst_83 = arith.constant dense<0.000000e+00> : vector<8x128xf32>
    %143 = tpu.matmul %140, %142, %cst_83 {dimension_numbers = #tpu.dot_dimension_numbers<[1], [0], [0], [1], [0, 0, 1, 1], [], []>} : vector<8x128xbf16>, vector<128x128xbf16>, vector<8x128xf32> -> vector<8x128xf32>
    %c10_84 = arith.constant 10 : index
    %c0_85 = arith.constant 0 : index
    %c0_86 = arith.constant 0 : index
    %144 = vector.load %arg3[%c10_84, %c0_85, %c0_86] : memref<15x1x128xf32, #tpu.memory_space<vmem>>, vector<1x1x128xf32>
    %145 = vector.shape_cast %144 : vector<1x1x128xf32> to vector<1x128xf32>
    %146 = vector.broadcast %145 : vector<1x128xf32> to vector<8x128xf32>
    %147 = arith.addf %143, %146 : vector<8x128xf32>
    %cst_87 = arith.constant 0.000000e+00 : f32
    %148 = vector.broadcast %cst_87 : f32 to vector<8x128xf32>
    %149 = arith.cmpf ogt, %147, %148 : vector<8x128xf32>
    %cst_88 = arith.constant 5.000000e-02 : f32
    %150 = vector.broadcast %cst_88 : f32 to vector<8x128xf32>
    %151 = arith.mulf %150, %147 : vector<8x128xf32>
    %152 = arith.select %149, %147, %151 : vector<8x128xi1>, vector<8x128xf32>
    %153 = arith.select %3, %152, %147 : vector<8x128xi1>, vector<8x128xf32>
    %154 = arith.truncf %153 : vector<8x128xf32> to vector<8x128xbf16>
    %c11 = arith.constant 11 : index
    %c0_89 = arith.constant 0 : index
    %c0_90 = arith.constant 0 : index
    %155 = vector.load %arg2[%c11, %c0_89, %c0_90] : memref<15x128x128xbf16, #tpu.memory_space<vmem>>, vector<1x128x128xbf16>
    %156 = vector.shape_cast %155 : vector<1x128x128xbf16> to vector<128x128xbf16>
    %cst_91 = arith.constant dense<0.000000e+00> : vector<8x128xf32>
    %157 = tpu.matmul %154, %156, %cst_91 {dimension_numbers = #tpu.dot_dimension_numbers<[1], [0], [0], [1], [0, 0, 1, 1], [], []>} : vector<8x128xbf16>, vector<128x128xbf16>, vector<8x128xf32> -> vector<8x128xf32>
    %c11_92 = arith.constant 11 : index
    %c0_93 = arith.constant 0 : index
    %c0_94 = arith.constant 0 : index
    %158 = vector.load %arg3[%c11_92, %c0_93, %c0_94] : memref<15x1x128xf32, #tpu.memory_space<vmem>>, vector<1x1x128xf32>
    %159 = vector.shape_cast %158 : vector<1x1x128xf32> to vector<1x128xf32>
    %160 = vector.broadcast %159 : vector<1x128xf32> to vector<8x128xf32>
    %161 = arith.addf %157, %160 : vector<8x128xf32>
    %162 = arith.addf %161, %153 : vector<8x128xf32>
    %cst_95 = arith.constant 0.000000e+00 : f32
    %163 = vector.broadcast %cst_95 : f32 to vector<8x128xf32>
    %164 = arith.cmpf ogt, %162, %163 : vector<8x128xf32>
    %cst_96 = arith.constant 5.000000e-02 : f32
    %165 = vector.broadcast %cst_96 : f32 to vector<8x128xf32>
    %166 = arith.mulf %165, %162 : vector<8x128xf32>
    %167 = arith.select %164, %162, %166 : vector<8x128xi1>, vector<8x128xf32>
    %168 = arith.truncf %167 : vector<8x128xf32> to vector<8x128xbf16>
    %c12 = arith.constant 12 : index
    %c0_97 = arith.constant 0 : index
    %c0_98 = arith.constant 0 : index
    %169 = vector.load %arg2[%c12, %c0_97, %c0_98] : memref<15x128x128xbf16, #tpu.memory_space<vmem>>, vector<1x128x128xbf16>
    %170 = vector.shape_cast %169 : vector<1x128x128xbf16> to vector<128x128xbf16>
    %cst_99 = arith.constant dense<0.000000e+00> : vector<8x128xf32>
    %171 = tpu.matmul %168, %170, %cst_99 {dimension_numbers = #tpu.dot_dimension_numbers<[1], [0], [0], [1], [0, 0, 1, 1], [], []>} : vector<8x128xbf16>, vector<128x128xbf16>, vector<8x128xf32> -> vector<8x128xf32>
    %c12_100 = arith.constant 12 : index
    %c0_101 = arith.constant 0 : index
    %c0_102 = arith.constant 0 : index
    %172 = vector.load %arg3[%c12_100, %c0_101, %c0_102] : memref<15x1x128xf32, #tpu.memory_space<vmem>>, vector<1x1x128xf32>
    %173 = vector.shape_cast %172 : vector<1x1x128xf32> to vector<1x128xf32>
    %174 = vector.broadcast %173 : vector<1x128xf32> to vector<8x128xf32>
    %175 = arith.addf %171, %174 : vector<8x128xf32>
    %cst_103 = arith.constant 0.000000e+00 : f32
    %176 = vector.broadcast %cst_103 : f32 to vector<8x128xf32>
    %177 = arith.cmpf ogt, %175, %176 : vector<8x128xf32>
    %cst_104 = arith.constant 5.000000e-02 : f32
    %178 = vector.broadcast %cst_104 : f32 to vector<8x128xf32>
    %179 = arith.mulf %178, %175 : vector<8x128xf32>
    %180 = arith.select %177, %175, %179 : vector<8x128xi1>, vector<8x128xf32>
    %181 = arith.truncf %180 : vector<8x128xf32> to vector<8x128xbf16>
    %c13 = arith.constant 13 : index
    %c0_105 = arith.constant 0 : index
    %c0_106 = arith.constant 0 : index
    %182 = vector.load %arg2[%c13, %c0_105, %c0_106] : memref<15x128x128xbf16, #tpu.memory_space<vmem>>, vector<1x128x128xbf16>
    %183 = vector.shape_cast %182 : vector<1x128x128xbf16> to vector<128x128xbf16>
    %cst_107 = arith.constant dense<0.000000e+00> : vector<8x128xf32>
    %184 = tpu.matmul %181, %183, %cst_107 {dimension_numbers = #tpu.dot_dimension_numbers<[1], [0], [0], [1], [0, 0, 1, 1], [], []>} : vector<8x128xbf16>, vector<128x128xbf16>, vector<8x128xf32> -> vector<8x128xf32>
    %c13_108 = arith.constant 13 : index
    %c0_109 = arith.constant 0 : index
    %c0_110 = arith.constant 0 : index
    %185 = vector.load %arg3[%c13_108, %c0_109, %c0_110] : memref<15x1x128xf32, #tpu.memory_space<vmem>>, vector<1x1x128xf32>
    %186 = vector.shape_cast %185 : vector<1x1x128xf32> to vector<1x128xf32>
    %187 = vector.broadcast %186 : vector<1x128xf32> to vector<8x128xf32>
    %188 = arith.addf %184, %187 : vector<8x128xf32>
    %cst_111 = arith.constant 0.000000e+00 : f32
    %189 = vector.broadcast %cst_111 : f32 to vector<8x128xf32>
    %190 = arith.cmpf ogt, %188, %189 : vector<8x128xf32>
    %cst_112 = arith.constant 5.000000e-02 : f32
    %191 = vector.broadcast %cst_112 : f32 to vector<8x128xf32>
    %192 = arith.mulf %191, %188 : vector<8x128xf32>
    %193 = arith.select %190, %188, %192 : vector<8x128xi1>, vector<8x128xf32>
    %194 = arith.truncf %193 : vector<8x128xf32> to vector<8x128xbf16>
    %c14 = arith.constant 14 : index
    %c0_113 = arith.constant 0 : index
    %c0_114 = arith.constant 0 : index
    %195 = vector.load %arg2[%c14, %c0_113, %c0_114] : memref<15x128x128xbf16, #tpu.memory_space<vmem>>, vector<1x128x128xbf16>
    %196 = vector.shape_cast %195 : vector<1x128x128xbf16> to vector<128x128xbf16>
    %cst_115 = arith.constant dense<0.000000e+00> : vector<8x128xf32>
    %197 = tpu.matmul %194, %196, %cst_115 {dimension_numbers = #tpu.dot_dimension_numbers<[1], [0], [0], [1], [0, 0, 1, 1], [], []>} : vector<8x128xbf16>, vector<128x128xbf16>, vector<8x128xf32> -> vector<8x128xf32>
    %c14_116 = arith.constant 14 : index
    %c0_117 = arith.constant 0 : index
    %c0_118 = arith.constant 0 : index
    %198 = vector.load %arg3[%c14_116, %c0_117, %c0_118] : memref<15x1x128xf32, #tpu.memory_space<vmem>>, vector<1x1x128xf32>
    %199 = vector.shape_cast %198 : vector<1x1x128xf32> to vector<1x128xf32>
    %200 = vector.broadcast %199 : vector<1x128xf32> to vector<8x128xf32>
    %201 = arith.addf %197, %200 : vector<8x128xf32>
    %cst_119 = arith.constant dense<0xFF800000> : vector<8xf32>
    %202 = vector.multi_reduction <maximumf>, %201, %cst_119 [1] : vector<8x128xf32> to vector<8xf32>
    %203 = vector.shape_cast %202 : vector<8xf32> to vector<8x1xf32>
    %204 = vector.broadcast %203 : vector<8x1xf32> to vector<8x128xf32>
    %205 = arith.subf %201, %204 : vector<8x128xf32>
    %206 = math.exp %205 : vector<8x128xf32>
    %cst_120 = arith.constant dense<0.000000e+00> : vector<8xf32>
    %207 = vector.multi_reduction <add>, %206, %cst_120 [1] : vector<8x128xf32> to vector<8xf32>
    %208 = vector.shape_cast %207 : vector<8xf32> to vector<8x1xf32>
    %209 = tpu.reciprocal %208 {approx = true} : vector<8x1xf32> -> vector<8x1xf32>
    %210 = arith.mulf %208, %209 : vector<8x1xf32>
    %cst_121 = arith.constant 2.000000e+00 : f32
    %211 = vector.broadcast %cst_121 : f32 to vector<8x1xf32>
    %212 = arith.subf %211, %210 : vector<8x1xf32>
    %213 = arith.mulf %209, %212 : vector<8x1xf32>
    %214 = vector.broadcast %213 : vector<8x1xf32> to vector<8x128xf32>
    %215 = arith.mulf %206, %214 : vector<8x128xf32>
    %c0_122 = arith.constant 0 : index
    %c0_123 = arith.constant 0 : index
    %216 = vector.load %arg4[%c0_122, %c0_123] : memref<8x128xf32, #tpu.memory_space<vmem>>, vector<8x128xf32>
    tpu.vector_store %arg4[%c0_122, %c0_123], %215 {strides = array<i32>} : memref<8x128xf32, #tpu.memory_space<vmem>>, vector<8x128xf32>,
    return
  }
  func.func @transform_0(%arg0: i32) -> (i32, i32) {
    %c0_i32 = arith.constant 0 : i32
    %c0_i32_0 = arith.constant 0 : i32
    return %arg0, %c0_i32 : i32, i32
  }
  func.func @transform_1(%arg0: i32) -> (i32, i32, i32) {
    %c0_i32 = arith.constant 0 : i32
    %c0_i32_0 = arith.constant 0 : i32
    %c0_i32_1 = arith.constant 0 : i32
    %c0_i32_2 = arith.constant 0 : i32
    return %c0_i32, %c0_i32_0, %c0_i32_1 : i32, i32, i32
  }
  func.func @transform_2(%arg0: i32) -> (i32, i32, i32) {
    %c0_i32 = arith.constant 0 : i32
    %c0_i32_0 = arith.constant 0 : i32
    %c0_i32_1 = arith.constant 0 : i32
    %c0_i32_2 = arith.constant 0 : i32
    return %c0_i32, %c0_i32_0, %c0_i32_1 : i32, i32, i32
  }
  func.func @transform_3(%arg0: i32) -> (i32, i32) {
    %c0_i32 = arith.constant 0 : i32
    %c0_i32_0 = arith.constant 0 : i32
    return %arg0, %c0_i32 : i32, i32
  }
}

module attributes {stable_mosaic.version = 11 : i64} {
  func.func @kernel(%arg0: i32, %arg1: memref<8x128xf32, #tpu.memory_space<vmem>>, %arg2: memref<15x128x128xbf16, #tpu.memory_space<vmem>>, %arg3: memref<15x1x128xf32, #tpu.memory_space<vmem>>, %arg4: memref<8x128xf32, #tpu.memory_space<vmem>>) attributes {dimension_semantics = [#tpu.dimension_semantics<parallel>], iteration_bounds = array<i64: 1>, scalar_prefetch = 0 : i64, scratch_operands = 0 : i64, tpu.core_type = #tpu.core_type<tc>, window_params = [{transform_indices = @transform_0, window_bounds = array<i64: 8, 128>}, {pipeline_mode = #tpu.pipeline_mode<synchronous>, transform_indices = @transform_1, window_bounds = array<i64: 15, 128, 128>}, {pipeline_mode = #tpu.pipeline_mode<synchronous>, transform_indices = @transform_2, window_bounds = array<i64: 15, 1, 128>}, {transform_indices = @transform_3, window_bounds = array<i64: 8, 128>}]} {
    %c0 = arith.constant 0 : index
    %c0_0 = arith.constant 0 : index
    %0 = vector.load %arg1[%c0, %c0_0] : memref<8x128xf32, #tpu.memory_space<vmem>>, vector<8x128xf32>
    %1 = tpu.iota {dimensions = array<i32: 1>} : vector<8x128xi32>
    %c64_i32 = arith.constant 64 : i32
    %2 = vector.broadcast %c64_i32 : i32 to vector<8x128xi32>
    %3 = arith.cmpi slt, %1, %2 : vector<8x128xi32>
    %4 = arith.truncf %0 : vector<8x128xf32> to vector<8x128xbf16>
    %c0_1 = arith.constant 0 : index
    %c0_2 = arith.constant 0 : index
    %c0_3 = arith.constant 0 : index
    %5 = vector.load %arg2[%c0_1, %c0_2, %c0_3] : memref<15x128x128xbf16, #tpu.memory_space<vmem>>, vector<1x128x128xbf16>
    %6 = vector.shape_cast %5 : vector<1x128x128xbf16> to vector<128x128xbf16>
    %cst = arith.constant dense<0.000000e+00> : vector<8x128xf32>
    %7 = tpu.matmul %4, %6, %cst {dimension_numbers = #tpu.dot_dimension_numbers<[1], [0], [0], [1], [0, 0, 1, 1], [], []>} : vector<8x128xbf16>, vector<128x128xbf16>, vector<8x128xf32> -> vector<8x128xf32>
    %c0_4 = arith.constant 0 : index
    %c0_5 = arith.constant 0 : index
    %c0_6 = arith.constant 0 : index
    %8 = vector.load %arg3[%c0_4, %c0_5, %c0_6] : memref<15x1x128xf32, #tpu.memory_space<vmem>>, vector<1x1x128xf32>
    %9 = vector.shape_cast %8 : vector<1x1x128xf32> to vector<1x128xf32>
    %10 = vector.broadcast %9 : vector<1x128xf32> to vector<8x128xf32>
    %11 = arith.addf %7, %10 : vector<8x128xf32>
    %cst_7 = arith.constant 0.000000e+00 : f32
    %12 = vector.broadcast %cst_7 : f32 to vector<8x128xf32>
    %13 = arith.cmpf ogt, %11, %12 : vector<8x128xf32>
    %cst_8 = arith.constant 5.000000e-02 : f32
    %14 = vector.broadcast %cst_8 : f32 to vector<8x128xf32>
    %15 = arith.mulf %14, %11 : vector<8x128xf32>
    %16 = arith.select %13, %11, %15 : vector<8x128xi1>, vector<8x128xf32>
    %17 = arith.truncf %16 : vector<8x128xf32> to vector<8x128xbf16>
    %c1 = arith.constant 1 : index
    %c0_9 = arith.constant 0 : index
    %c0_10 = arith.constant 0 : index
    %18 = vector.load %arg2[%c1, %c0_9, %c0_10] : memref<15x128x128xbf16, #tpu.memory_space<vmem>>, vector<1x128x128xbf16>
    %19 = vector.shape_cast %18 : vector<1x128x128xbf16> to vector<128x128xbf16>
    %cst_11 = arith.constant dense<0.000000e+00> : vector<8x128xf32>
    %20 = tpu.matmul %17, %19, %cst_11 {dimension_numbers = #tpu.dot_dimension_numbers<[1], [0], [0], [1], [0, 0, 1, 1], [], []>} : vector<8x128xbf16>, vector<128x128xbf16>, vector<8x128xf32> -> vector<8x128xf32>
    %c1_12 = arith.constant 1 : index
    %c0_13 = arith.constant 0 : index
    %c0_14 = arith.constant 0 : index
    %21 = vector.load %arg3[%c1_12, %c0_13, %c0_14] : memref<15x1x128xf32, #tpu.memory_space<vmem>>, vector<1x1x128xf32>
    %22 = vector.shape_cast %21 : vector<1x1x128xf32> to vector<1x128xf32>
    %23 = vector.broadcast %22 : vector<1x128xf32> to vector<8x128xf32>
    %24 = arith.addf %20, %23 : vector<8x128xf32>
    %25 = arith.addf %24, %0 : vector<8x128xf32>
    %cst_15 = arith.constant 0.000000e+00 : f32
    %26 = vector.broadcast %cst_15 : f32 to vector<8x128xf32>
    %27 = arith.cmpf ogt, %25, %26 : vector<8x128xf32>
    %cst_16 = arith.constant 5.000000e-02 : f32
    %28 = vector.broadcast %cst_16 : f32 to vector<8x128xf32>
    %29 = arith.mulf %28, %25 : vector<8x128xf32>
    %30 = arith.select %27, %25, %29 : vector<8x128xi1>, vector<8x128xf32>
    %31 = arith.truncf %30 : vector<8x128xf32> to vector<8x128xbf16>
    %c2 = arith.constant 2 : index
    %c0_17 = arith.constant 0 : index
    %c0_18 = arith.constant 0 : index
    %32 = vector.load %arg2[%c2, %c0_17, %c0_18] : memref<15x128x128xbf16, #tpu.memory_space<vmem>>, vector<1x128x128xbf16>
    %33 = vector.shape_cast %32 : vector<1x128x128xbf16> to vector<128x128xbf16>
    %cst_19 = arith.constant dense<0.000000e+00> : vector<8x128xf32>
    %34 = tpu.matmul %31, %33, %cst_19 {dimension_numbers = #tpu.dot_dimension_numbers<[1], [0], [0], [1], [0, 0, 1, 1], [], []>} : vector<8x128xbf16>, vector<128x128xbf16>, vector<8x128xf32> -> vector<8x128xf32>
    %c2_20 = arith.constant 2 : index
    %c0_21 = arith.constant 0 : index
    %c0_22 = arith.constant 0 : index
    %35 = vector.load %arg3[%c2_20, %c0_21, %c0_22] : memref<15x1x128xf32, #tpu.memory_space<vmem>>, vector<1x1x128xf32>
    %36 = vector.shape_cast %35 : vector<1x1x128xf32> to vector<1x128xf32>
    %37 = vector.broadcast %36 : vector<1x128xf32> to vector<8x128xf32>
    %38 = arith.addf %34, %37 : vector<8x128xf32>
    %cst_23 = arith.constant 0.000000e+00 : f32
    %39 = vector.broadcast %cst_23 : f32 to vector<8x128xf32>
    %40 = arith.cmpf ogt, %38, %39 : vector<8x128xf32>
    %cst_24 = arith.constant 5.000000e-02 : f32
    %41 = vector.broadcast %cst_24 : f32 to vector<8x128xf32>
    %42 = arith.mulf %41, %38 : vector<8x128xf32>
    %43 = arith.select %40, %38, %42 : vector<8x128xi1>, vector<8x128xf32>
    %44 = arith.truncf %43 : vector<8x128xf32> to vector<8x128xbf16>
    %c3 = arith.constant 3 : index
    %c0_25 = arith.constant 0 : index
    %c0_26 = arith.constant 0 : index
    %45 = vector.load %arg2[%c3, %c0_25, %c0_26] : memref<15x128x128xbf16, #tpu.memory_space<vmem>>, vector<1x128x128xbf16>
    %46 = vector.shape_cast %45 : vector<1x128x128xbf16> to vector<128x128xbf16>
    %cst_27 = arith.constant dense<0.000000e+00> : vector<8x128xf32>
    %47 = tpu.matmul %44, %46, %cst_27 {dimension_numbers = #tpu.dot_dimension_numbers<[1], [0], [0], [1], [0, 0, 1, 1], [], []>} : vector<8x128xbf16>, vector<128x128xbf16>, vector<8x128xf32> -> vector<8x128xf32>
    %c3_28 = arith.constant 3 : index
    %c0_29 = arith.constant 0 : index
    %c0_30 = arith.constant 0 : index
    %48 = vector.load %arg3[%c3_28, %c0_29, %c0_30] : memref<15x1x128xf32, #tpu.memory_space<vmem>>, vector<1x1x128xf32>
    %49 = vector.shape_cast %48 : vector<1x1x128xf32> to vector<1x128xf32>
    %50 = vector.broadcast %49 : vector<1x128xf32> to vector<8x128xf32>
    %51 = arith.addf %47, %50 : vector<8x128xf32>
    %52 = arith.addf %51, %30 : vector<8x128xf32>
    %cst_31 = arith.constant 0.000000e+00 : f32
    %53 = vector.broadcast %cst_31 : f32 to vector<8x128xf32>
    %54 = arith.cmpf ogt, %52, %53 : vector<8x128xf32>
    %cst_32 = arith.constant 5.000000e-02 : f32
    %55 = vector.broadcast %cst_32 : f32 to vector<8x128xf32>
    %56 = arith.mulf %55, %52 : vector<8x128xf32>
    %57 = arith.select %54, %52, %56 : vector<8x128xi1>, vector<8x128xf32>
    %58 = arith.truncf %57 : vector<8x128xf32> to vector<8x128xbf16>
    %c4 = arith.constant 4 : index
    %c0_33 = arith.constant 0 : index
    %c0_34 = arith.constant 0 : index
    %59 = vector.load %arg2[%c4, %c0_33, %c0_34] : memref<15x128x128xbf16, #tpu.memory_space<vmem>>, vector<1x128x128xbf16>
    %60 = vector.shape_cast %59 : vector<1x128x128xbf16> to vector<128x128xbf16>
    %cst_35 = arith.constant dense<0.000000e+00> : vector<8x128xf32>
    %61 = tpu.matmul %58, %60, %cst_35 {dimension_numbers = #tpu.dot_dimension_numbers<[1], [0], [0], [1], [0, 0, 1, 1], [], []>} : vector<8x128xbf16>, vector<128x128xbf16>, vector<8x128xf32> -> vector<8x128xf32>
    %c4_36 = arith.constant 4 : index
    %c0_37 = arith.constant 0 : index
    %c0_38 = arith.constant 0 : index
    %62 = vector.load %arg3[%c4_36, %c0_37, %c0_38] : memref<15x1x128xf32, #tpu.memory_space<vmem>>, vector<1x1x128xf32>
    %63 = vector.shape_cast %62 : vector<1x1x128xf32> to vector<1x128xf32>
    %64 = vector.broadcast %63 : vector<1x128xf32> to vector<8x128xf32>
    %65 = arith.addf %61, %64 : vector<8x128xf32>
    %cst_39 = arith.constant 0.000000e+00 : f32
    %66 = vector.broadcast %cst_39 : f32 to vector<8x128xf32>
    %67 = arith.cmpf ogt, %65, %66 : vector<8x128xf32>
    %cst_40 = arith.constant 5.000000e-02 : f32
    %68 = vector.broadcast %cst_40 : f32 to vector<8x128xf32>
    %69 = arith.mulf %68, %65 : vector<8x128xf32>
    %70 = arith.select %67, %65, %69 : vector<8x128xi1>, vector<8x128xf32>
    %71 = arith.select %3, %70, %65 : vector<8x128xi1>, vector<8x128xf32>
    %72 = arith.truncf %71 : vector<8x128xf32> to vector<8x128xbf16>
    %c5 = arith.constant 5 : index
    %c0_41 = arith.constant 0 : index
    %c0_42 = arith.constant 0 : index
    %73 = vector.load %arg2[%c5, %c0_41, %c0_42] : memref<15x128x128xbf16, #tpu.memory_space<vmem>>, vector<1x128x128xbf16>
    %74 = vector.shape_cast %73 : vector<1x128x128xbf16> to vector<128x128xbf16>
    %cst_43 = arith.constant dense<0.000000e+00> : vector<8x128xf32>
    %75 = tpu.matmul %72, %74, %cst_43 {dimension_numbers = #tpu.dot_dimension_numbers<[1], [0], [0], [1], [0, 0, 1, 1], [], []>} : vector<8x128xbf16>, vector<128x128xbf16>, vector<8x128xf32> -> vector<8x128xf32>
    %c5_44 = arith.constant 5 : index
    %c0_45 = arith.constant 0 : index
    %c0_46 = arith.constant 0 : index
    %76 = vector.load %arg3[%c5_44, %c0_45, %c0_46] : memref<15x1x128xf32, #tpu.memory_space<vmem>>, vector<1x1x128xf32>
    %77 = vector.shape_cast %76 : vector<1x1x128xf32> to vector<1x128xf32>
    %78 = vector.broadcast %77 : vector<1x128xf32> to vector<8x128xf32>
    %79 = arith.addf %75, %78 : vector<8x128xf32>
    %80 = arith.addf %79, %71 : vector<8x128xf32>
    %cst_47 = arith.constant 0.000000e+00 : f32
    %81 = vector.broadcast %cst_47 : f32 to vector<8x128xf32>
    %82 = arith.cmpf ogt, %80, %81 : vector<8x128xf32>
    %cst_48 = arith.constant 5.000000e-02 : f32
    %83 = vector.broadcast %cst_48 : f32 to vector<8x128xf32>
    %84 = arith.mulf %83, %80 : vector<8x128xf32>
    %85 = arith.select %82, %80, %84 : vector<8x128xi1>, vector<8x128xf32>
    %86 = arith.truncf %85 : vector<8x128xf32> to vector<8x128xbf16>
    %c6 = arith.constant 6 : index
    %c0_49 = arith.constant 0 : index
    %c0_50 = arith.constant 0 : index
    %87 = vector.load %arg2[%c6, %c0_49, %c0_50] : memref<15x128x128xbf16, #tpu.memory_space<vmem>>, vector<1x128x128xbf16>
    %88 = vector.shape_cast %87 : vector<1x128x128xbf16> to vector<128x128xbf16>
    %cst_51 = arith.constant dense<0.000000e+00> : vector<8x128xf32>
    %89 = tpu.matmul %86, %88, %cst_51 {dimension_numbers = #tpu.dot_dimension_numbers<[1], [0], [0], [1], [0, 0, 1, 1], [], []>} : vector<8x128xbf16>, vector<128x128xbf16>, vector<8x128xf32> -> vector<8x128xf32>
    %c6_52 = arith.constant 6 : index
    %c0_53 = arith.constant 0 : index
    %c0_54 = arith.constant 0 : index
    %90 = vector.load %arg3[%c6_52, %c0_53, %c0_54] : memref<15x1x128xf32, #tpu.memory_space<vmem>>, vector<1x1x128xf32>
    %91 = vector.shape_cast %90 : vector<1x1x128xf32> to vector<1x128xf32>
    %92 = vector.broadcast %91 : vector<1x128xf32> to vector<8x128xf32>
    %93 = arith.addf %89, %92 : vector<8x128xf32>
    %cst_55 = arith.constant 0.000000e+00 : f32
    %94 = vector.broadcast %cst_55 : f32 to vector<8x128xf32>
    %95 = arith.cmpf ogt, %93, %94 : vector<8x128xf32>
    %cst_56 = arith.constant 5.000000e-02 : f32
    %96 = vector.broadcast %cst_56 : f32 to vector<8x128xf32>
    %97 = arith.mulf %96, %93 : vector<8x128xf32>
    %98 = arith.select %95, %93, %97 : vector<8x128xi1>, vector<8x128xf32>
    %99 = arith.truncf %98 : vector<8x128xf32> to vector<8x128xbf16>
    %c7 = arith.constant 7 : index
    %c0_57 = arith.constant 0 : index
    %c0_58 = arith.constant 0 : index
    %100 = vector.load %arg2[%c7, %c0_57, %c0_58] : memref<15x128x128xbf16, #tpu.memory_space<vmem>>, vector<1x128x128xbf16>
    %101 = vector.shape_cast %100 : vector<1x128x128xbf16> to vector<128x128xbf16>
    %cst_59 = arith.constant dense<0.000000e+00> : vector<8x128xf32>
    %102 = tpu.matmul %99, %101, %cst_59 {dimension_numbers = #tpu.dot_dimension_numbers<[1], [0], [0], [1], [0, 0, 1, 1], [], []>} : vector<8x128xbf16>, vector<128x128xbf16>, vector<8x128xf32> -> vector<8x128xf32>
    %c7_60 = arith.constant 7 : index
    %c0_61 = arith.constant 0 : index
    %c0_62 = arith.constant 0 : index
    %103 = vector.load %arg3[%c7_60, %c0_61, %c0_62] : memref<15x1x128xf32, #tpu.memory_space<vmem>>, vector<1x1x128xf32>
    %104 = vector.shape_cast %103 : vector<1x1x128xf32> to vector<1x128xf32>
    %105 = vector.broadcast %104 : vector<1x128xf32> to vector<8x128xf32>
    %106 = arith.addf %102, %105 : vector<8x128xf32>
    %107 = arith.addf %106, %85 : vector<8x128xf32>
    %cst_63 = arith.constant 0.000000e+00 : f32
    %108 = vector.broadcast %cst_63 : f32 to vector<8x128xf32>
    %109 = arith.cmpf ogt, %107, %108 : vector<8x128xf32>
    %cst_64 = arith.constant 5.000000e-02 : f32
    %110 = vector.broadcast %cst_64 : f32 to vector<8x128xf32>
    %111 = arith.mulf %110, %107 : vector<8x128xf32>
    %112 = arith.select %109, %107, %111 : vector<8x128xi1>, vector<8x128xf32>
    %113 = arith.truncf %112 : vector<8x128xf32> to vector<8x128xbf16>
    %c8 = arith.constant 8 : index
    %c0_65 = arith.constant 0 : index
    %c0_66 = arith.constant 0 : index
    %114 = vector.load %arg2[%c8, %c0_65, %c0_66] : memref<15x128x128xbf16, #tpu.memory_space<vmem>>, vector<1x128x128xbf16>
    %115 = vector.shape_cast %114 : vector<1x128x128xbf16> to vector<128x128xbf16>
    %cst_67 = arith.constant dense<0.000000e+00> : vector<8x128xf32>
    %116 = tpu.matmul %113, %115, %cst_67 {dimension_numbers = #tpu.dot_dimension_numbers<[1], [0], [0], [1], [0, 0, 1, 1], [], []>} : vector<8x128xbf16>, vector<128x128xbf16>, vector<8x128xf32> -> vector<8x128xf32>
    %c8_68 = arith.constant 8 : index
    %c0_69 = arith.constant 0 : index
    %c0_70 = arith.constant 0 : index
    %117 = vector.load %arg3[%c8_68, %c0_69, %c0_70] : memref<15x1x128xf32, #tpu.memory_space<vmem>>, vector<1x1x128xf32>
    %118 = vector.shape_cast %117 : vector<1x1x128xf32> to vector<1x128xf32>
    %119 = vector.broadcast %118 : vector<1x128xf32> to vector<8x128xf32>
    %120 = arith.addf %116, %119 : vector<8x128xf32>
    %cst_71 = arith.constant 0.000000e+00 : f32
    %121 = vector.broadcast %cst_71 : f32 to vector<8x128xf32>
    %122 = arith.cmpf ogt, %120, %121 : vector<8x128xf32>
    %cst_72 = arith.constant 5.000000e-02 : f32
    %123 = vector.broadcast %cst_72 : f32 to vector<8x128xf32>
    %124 = arith.mulf %123, %120 : vector<8x128xf32>
    %125 = arith.select %122, %120, %124 : vector<8x128xi1>, vector<8x128xf32>
    %126 = arith.truncf %125 : vector<8x128xf32> to vector<8x128xbf16>
    %c9 = arith.constant 9 : index
    %c0_73 = arith.constant 0 : index
    %c0_74 = arith.constant 0 : index
    %127 = vector.load %arg2[%c9, %c0_73, %c0_74] : memref<15x128x128xbf16, #tpu.memory_space<vmem>>, vector<1x128x128xbf16>
    %128 = vector.shape_cast %127 : vector<1x128x128xbf16> to vector<128x128xbf16>
    %cst_75 = arith.constant dense<0.000000e+00> : vector<8x128xf32>
    %129 = tpu.matmul %126, %128, %cst_75 {dimension_numbers = #tpu.dot_dimension_numbers<[1], [0], [0], [1], [0, 0, 1, 1], [], []>} : vector<8x128xbf16>, vector<128x128xbf16>, vector<8x128xf32> -> vector<8x128xf32>
    %c9_76 = arith.constant 9 : index
    %c0_77 = arith.constant 0 : index
    %c0_78 = arith.constant 0 : index
    %130 = vector.load %arg3[%c9_76, %c0_77, %c0_78] : memref<15x1x128xf32, #tpu.memory_space<vmem>>, vector<1x1x128xf32>
    %131 = vector.shape_cast %130 : vector<1x1x128xf32> to vector<1x128xf32>
    %132 = vector.broadcast %131 : vector<1x128xf32> to vector<8x128xf32>
    %133 = arith.addf %129, %132 : vector<8x128xf32>
    %134 = arith.addf %133, %112 : vector<8x128xf32>
    %cst_79 = arith.constant 0.000000e+00 : f32
    %135 = vector.broadcast %cst_79 : f32 to vector<8x128xf32>
    %136 = arith.cmpf ogt, %134, %135 : vector<8x128xf32>
    %cst_80 = arith.constant 5.000000e-02 : f32
    %137 = vector.broadcast %cst_80 : f32 to vector<8x128xf32>
    %138 = arith.mulf %137, %134 : vector<8x128xf32>
    %139 = arith.select %136, %134, %138 : vector<8x128xi1>, vector<8x128xf32>
    %140 = arith.truncf %139 : vector<8x128xf32> to vector<8x128xbf16>
    %c10 = arith.constant 10 : index
    %c0_81 = arith.constant 0 : index
    %c0_82 = arith.constant 0 : index
    %141 = vector.load %arg2[%c10, %c0_81, %c0_82] : memref<15x128x128xbf16, #tpu.memory_space<vmem>>, vector<1x128x128xbf16>
    %142 = vector.shape_cast %141 : vector<1x128x128xbf16> to vector<128x128xbf16>
    %cst_83 = arith.constant dense<0.000000e+00> : vector<8x128xf32>
    %143 = tpu.matmul %140, %142, %cst_83 {dimension_numbers = #tpu.dot_dimension_numbers<[1], [0], [0], [1], [0, 0, 1, 1], [], []>} : vector<8x128xbf16>, vector<128x128xbf16>, vector<8x128xf32> -> vector<8x128xf32>
    %c10_84 = arith.constant 10 : index
    %c0_85 = arith.constant 0 : index
    %c0_86 = arith.constant 0 : index
    %144 = vector.load %arg3[%c10_84, %c0_85, %c0_86] : memref<15x1x128xf32, #tpu.memory_space<vmem>>, vector<1x1x128xf32>
    %145 = vector.shape_cast %144 : vector<1x1x128xf32> to vector<1x128xf32>
    %146 = vector.broadcast %145 : vector<1x128xf32> to vector<8x128xf32>
    %147 = arith.addf %143, %146 : vector<8x128xf32>
    %cst_87 = arith.constant 0.000000e+00 : f32
    %148 = vector.broadcast %cst_87 : f32 to vector<8x128xf32>
    %149 = arith.cmpf ogt, %147, %148 : vector<8x128xf32>
    %cst_88 = arith.constant 5.000000e-02 : f32
    %150 = vector.broadcast %cst_88 : f32 to vector<8x128xf32>
    %151 = arith.mulf %150, %147 : vector<8x128xf32>
    %152 = arith.select %149, %147, %151 : vector<8x128xi1>, vector<8x128xf32>
    %153 = arith.select %3, %152, %147 : vector<8x128xi1>, vector<8x128xf32>
    %154 = arith.truncf %153 : vector<8x128xf32> to vector<8x128xbf16>
    %c11 = arith.constant 11 : index
    %c0_89 = arith.constant 0 : index
    %c0_90 = arith.constant 0 : index
    %155 = vector.load %arg2[%c11, %c0_89, %c0_90] : memref<15x128x128xbf16, #tpu.memory_space<vmem>>, vector<1x128x128xbf16>
    %156 = vector.shape_cast %155 : vector<1x128x128xbf16> to vector<128x128xbf16>
    %cst_91 = arith.constant dense<0.000000e+00> : vector<8x128xf32>
    %157 = tpu.matmul %154, %156, %cst_91 {dimension_numbers = #tpu.dot_dimension_numbers<[1], [0], [0], [1], [0, 0, 1, 1], [], []>} : vector<8x128xbf16>, vector<128x128xbf16>, vector<8x128xf32> -> vector<8x128xf32>
    %c11_92 = arith.constant 11 : index
    %c0_93 = arith.constant 0 : index
    %c0_94 = arith.constant 0 : index
    %158 = vector.load %arg3[%c11_92, %c0_93, %c0_94] : memref<15x1x128xf32, #tpu.memory_space<vmem>>, vector<1x1x128xf32>
    %159 = vector.shape_cast %158 : vector<1x1x128xf32> to vector<1x128xf32>
    %160 = vector.broadcast %159 : vector<1x128xf32> to vector<8x128xf32>
    %161 = arith.addf %157, %160 : vector<8x128xf32>
    %162 = arith.addf %161, %153 : vector<8x128xf32>
    %cst_95 = arith.constant 0.000000e+00 : f32
    %163 = vector.broadcast %cst_95 : f32 to vector<8x128xf32>
    %164 = arith.cmpf ogt, %162, %163 : vector<8x128xf32>
    %cst_96 = arith.constant 5.000000e-02 : f32
    %165 = vector.broadcast %cst_96 : f32 to vector<8x128xf32>
    %166 = arith.mulf %165, %162 : vector<8x128xf32>
    %167 = arith.select %164, %162, %166 : vector<8x128xi1>, vector<8x128xf32>
    %168 = arith.truncf %167 : vector<8x128xf32> to vector<8x128xbf16>
    %c12 = arith.constant 12 : index
    %c0_97 = arith.constant 0 : index
    %c0_98 = arith.constant 0 : index
    %169 = vector.load %arg2[%c12, %c0_97, %c0_98] : memref<15x128x128xbf16, #tpu.memory_space<vmem>>, vector<1x128x128xbf16>
    %170 = vector.shape_cast %169 : vector<1x128x128xbf16> to vector<128x128xbf16>
    %cst_99 = arith.constant dense<0.000000e+00> : vector<8x128xf32>
    %171 = tpu.matmul %168, %170, %cst_99 {dimension_numbers = #tpu.dot_dimension_numbers<[1], [0], [0], [1], [0, 0, 1, 1], [], []>} : vector<8x128xbf16>, vector<128x128xbf16>, vector<8x128xf32> -> vector<8x128xf32>
    %c12_100 = arith.constant 12 : index
    %c0_101 = arith.constant 0 : index
    %c0_102 = arith.constant 0 : index
    %172 = vector.load %arg3[%c12_100, %c0_101, %c0_102] : memref<15x1x128xf32, #tpu.memory_space<vmem>>, vector<1x1x128xf32>
    %173 = vector.shape_cast %172 : vector<1x1x128xf32> to vector<1x128xf32>
    %174 = vector.broadcast %173 : vector<1x128xf32> to vector<8x128xf32>
    %175 = arith.addf %171, %174 : vector<8x128xf32>
    %cst_103 = arith.constant 0.000000e+00 : f32
    %176 = vector.broadcast %cst_103 : f32 to vector<8x128xf32>
    %177 = arith.cmpf ogt, %175, %176 : vector<8x128xf32>
    %cst_104 = arith.constant 5.000000e-02 : f32
    %178 = vector.broadcast %cst_104 : f32 to vector<8x128xf32>
    %179 = arith.mulf %178, %175 : vector<8x128xf32>
    %180 = arith.select %177, %175, %179 : vector<8x128xi1>, vector<8x128xf32>
    %181 = arith.truncf %180 : vector<8x128xf32> to vector<8x128xbf16>
    %c13 = arith.constant 13 : index
    %c0_105 = arith.constant 0 : index
    %c0_106 = arith.constant 0 : index
    %182 = vector.load %arg2[%c13, %c0_105, %c0_106] : memref<15x128x128xbf16, #tpu.memory_space<vmem>>, vector<1x128x128xbf16>
    %183 = vector.shape_cast %182 : vector<1x128x128xbf16> to vector<128x128xbf16>
    %cst_107 = arith.constant dense<0.000000e+00> : vector<8x128xf32>
    %184 = tpu.matmul %181, %183, %cst_107 {dimension_numbers = #tpu.dot_dimension_numbers<[1], [0], [0], [1], [0, 0, 1, 1], [], []>} : vector<8x128xbf16>, vector<128x128xbf16>, vector<8x128xf32> -> vector<8x128xf32>
    %c13_108 = arith.constant 13 : index
    %c0_109 = arith.constant 0 : index
    %c0_110 = arith.constant 0 : index
    %185 = vector.load %arg3[%c13_108, %c0_109, %c0_110] : memref<15x1x128xf32, #tpu.memory_space<vmem>>, vector<1x1x128xf32>
    %186 = vector.shape_cast %185 : vector<1x1x128xf32> to vector<1x128xf32>
    %187 = vector.broadcast %186 : vector<1x128xf32> to vector<8x128xf32>
    %188 = arith.addf %184, %187 : vector<8x128xf32>
    %cst_111 = arith.constant 0.000000e+00 : f32
    %189 = vector.broadcast %cst_111 : f32 to vector<8x128xf32>
    %190 = arith.cmpf ogt, %188, %189 : vector<8x128xf32>
    %cst_112 = arith.constant 5.000000e-02 : f32
    %191 = vector.broadcast %cst_112 : f32 to vector<8x128xf32>
    %192 = arith.mulf %191, %188 : vector<8x128xf32>
    %193 = arith.select %190, %188, %192 : vector<8x128xi1>, vector<8x128xf32>
    %194 = arith.truncf %193 : vector<8x128xf32> to vector<8x128xbf16>
    %c14 = arith.constant 14 : index
    %c0_113 = arith.constant 0 : index
    %c0_114 = arith.constant 0 : index
    %195 = vector.load %arg2[%c14, %c0_113, %c0_114] : memref<15x128x128xbf16, #tpu.memory_space<vmem>>, vector<1x128x128xbf16>
    %196 = vector.shape_cast %195 : vector<1x128x128xbf16> to vector<128x128xbf16>
    %cst_115 = arith.constant dense<0.000000e+00> : vector<8x128xf32>
    %197 = tpu.matmul %194, %196, %cst_115 {dimension_numbers = #tpu.dot_dimension_numbers<[1], [0], [0], [1], [0, 0, 1, 1], [], []>} : vector<8x128xbf16>, vector<128x128xbf16>, vector<8x128xf32> -> vector<8x128xf32>
    %c14_116 = arith.constant 14 : index
    %c0_117 = arith.constant 0 : index
    %c0_118 = arith.constant 0 : index
    %198 = vector.load %arg3[%c14_116, %c0_117, %c0_118] : memref<15x1x128xf32, #tpu.memory_space<vmem>>, vector<1x1x128xf32>
    %199 = vector.shape_cast %198 : vector<1x1x128xf32> to vector<1x128xf32>
    %200 = vector.broadcast %199 : vector<1x128xf32> to vector<8x128xf32>
    %201 = arith.addf %197, %200 : vector<8x128xf32>
    %cst_119 = arith.constant dense<0xFF800000> : vector<8xf32>
    %202 = vector.multi_reduction <maximumf>, %201, %cst_119 [1] : vector<8x128xf32> to vector<8xf32>
    %203 = vector.shape_cast %202 : vector<8xf32> to vector<8x1xf32>
    %204 = vector.broadcast %203 : vector<8x1xf32> to vector<8x128xf32>
    %205 = arith.subf %201, %204 : vector<8x128xf32>
    %206 = math.exp %205 : vector<8x128xf32>
    %cst_120 = arith.constant dense<0.000000e+00> : vector<8xf32>
    %207 = vector.multi_reduction <add>, %206, %cst_120 [1] : vector<8x128xf32> to vector<8xf32>
    %208 = vector.shape_cast %207 : vector<8xf32> to vector<8x1xf32>
    %209 = tpu.reciprocal %208 {approx = true} : vector<8x1xf32> -> vector<8x1xf32>
    %210 = arith.mulf %208, %209 : vector<8x1xf32>
    %cst_121 = arith.constant 2.000000e+00 : f32
    %211 = vector.broadcast %cst_121 : f32 to vector<8x1xf32>
    %212 = arith.subf %211, %210 : vector<8x1xf32>
    %213 = arith.mulf %209, %212 : vector<8x1xf32>
    %214 = vector.broadcast %213 : vector<8x1xf32> to vector<8x128xf32>
    %215 = arith.mulf %206, %214 : vector<8x128xf32>
    %c0_122 = arith.constant 0 : index
    %c0_123 = arith.constant 0 : index
    %216 = vector.load %arg4[%c0_122, %c0_123] : memref<8x128xf32, #tpu.memory_space<vmem>>, vector<8x128xf32>
    tpu.vector_store %arg4[%c0_122, %c0_123], %215 {strides = array<i32>} : memref<8x128xf32, #tpu.memory_space<vmem>>, vector<8x128xf32>,
    return
  }
  func.func @transform_0(%arg0: i32) -> (i32, i32) {
    %c0_i32 = arith.constant 0 : i32
    %c0_i32_0 = arith.constant 0 : i32
    return %arg0, %c0_i32 : i32, i32
  }
  func.func @transform_1(%arg0: i32) -> (i32, i32, i32) {
    %c0_i32 = arith.constant 0 : i32
    %c0_i32_0 = arith.constant 0 : i32
    %c0_i32_1 = arith.constant 0 : i32
    %c0_i32_2 = arith.constant 0 : i32
    return %c0_i32, %c0_i32_0, %c0_i32_1 : i32, i32, i32
  }
  func.func @transform_2(%arg0: i32) -> (i32, i32, i32) {
    %c0_i32 = arith.constant 0 : i32
    %c0_i32_0 = arith.constant 0 : i32
    %c0_i32_1 = arith.constant 0 : i32
    %c0_i32_2 = arith.constant 0 : i32
    return %c0_i32, %c0_i32_0, %c0_i32_1 : i32, i32, i32
  }
  func.func @transform_3(%arg0: i32) -> (i32, i32) {
    %c0_i32 = arith.constant 0 : i32
    %c0_i32_0 = arith.constant 0 : i32
    return %arg0, %c0_i32 : i32, i32
  }
}

</mosaic_0001>

<bundles_post_ra>
// kernel: tpu_custom_call.1
= control target key start
LH: loop header
LB: loop body
LE: loop exit
PB: predicated region body
PF: predicated region fallthrough
CT: control target
= control target key end

     0   :  { %8 = vsyncpa [#allocation3], 0  ;;  %s2179_s0 = inlined_call_operand.hbm [shape: f32[8,128], index: 0, kind: input, shape index: {}]   ;;  %s2180_s1 = inlined_call_operand.hbm [shape: bf16[15,128,128], index: 1, kind: input, shape index: {}]   ;;  %s2181_s2 = inlined_call_operand.hbm [shape: f32[15,1,128], index: 2, kind: input, shape index: {}]   ;;  %s2182_s3 = inlined_call_operand.hbm [shape: f32[8,128], index: 3, kind: output, shape index: {}]  }
   0x1   :  { %9 = vsyncpa [#allocation6], 0  ;;  %s26_s14 = sshll.u32 %s2180_s1, 4  ;;  %s27_s14 = int_to_ptr.hbm [resolvable:$true] %s26_s14 }
   0x2   :  { %10 = vsyncpa [#allocation4], 0  ;;  %s2132_s15 = smov [#allocation5]   ;;  %s16_s19 = sshll.u32 %s2179_s0, 4  ;;  %s17_s19 = int_to_ptr.hbm [resolvable:$true] %s16_s19 }
   0x3   :  { %s28_s16 = sshll.u32 %s2132_s15, 4  ;;  %s2133_s20 = smov 64   ;;  %s29_s16 = int_to_ptr.vmem [resolvable:$true] %s28_s16 }
   0x4   :  { %s2134_s21 = smov 4   ;;  %s2135_s22 = smov [#allocation2]  }
   0x5   :  { %34 = dma.hbm_to_vmem [thread:$0]  %s27_s14, 15360, %s29_s16, [#allocation6], %s2133_s20, %s2133_s20, %s2134_s21  }
   0x6   :  { %s18_s23 = sshll.u32 %s2135_s22, 4  ;;  %s39_s26 = sshll.u32 %s2181_s2, 4  ;;  %s19_s23 = int_to_ptr.vmem [resolvable:$true] %s18_s23  ;;  %s40_s26 = int_to_ptr.hbm [resolvable:$true] %s39_s26 }
   0x7   :  { %21 = dma.hbm_to_vmem [thread:$0]  %s17_s19, 128, %s19_s23, [#allocation3]  }
   0x8   :  { %s2136_s1 = smov [#allocation7]   ;;  %s2137_s28 = smov 16  }
   0x9   :  { %s41_s27 = sshll.u32 %s2136_s1, 4  ;;  %s2138_s29 = smov 1   ;;  %s42_s27 = int_to_ptr.vmem [resolvable:$true] %s41_s27 }
   0xa   :  { %47 = dma.hbm_to_vmem [thread:$0]  %s40_s26, 240, %s42_s27, [#allocation6], %s2137_s28, %s2137_s28, %s2138_s29  }
   0xb   :  { %2126 = dma.done.wait [#allocation3], 128  }
   0xc   :  { %2127 = vsyncadd [#allocation3], 4294967168 }
   0xd   :  { %2128 = dma.done.wait [#allocation6], 15600  }
   0xe   :  { %2129 = vsyncadd [#allocation6], 4294951696  ;;  %v1890_v0 = vld [vmem:[#allocation5 + $0x38] sm:$0xff]  ;;  %v1889_v1 = vld [vmem:[#allocation5 + $0x30] sm:$0xff]  ;;  %s2139_s0 = smov [#allocation8]   ;;  %s1392_s5 = sshll.u32 %s2182_s3, 4  ;;  %s1393_s5 = int_to_ptr.hbm [resolvable:$true] %s1392_s5 }
   0xf   :  { %133 = vmatpush.bf16.msra.mxu0 %v1890_v0  ;;  %v1898_v2 = vld [vmem:[#allocation5 + $0x78] sm:$0xff]  ;;  %v1888_v3 = vld [vmem:[#allocation5 + $0x28] sm:$0xff]  ;;  %v1897_v4 = vld [vmem:[#allocation5 + $0x70] sm:$0xff]  ;;  %s1390_s2 = sshll.u32 %s2139_s0, 4  ;;  %s1391_s2 = int_to_ptr.vmem [resolvable:$true] %s1390_s2 }
  0x10   :  { %220 = vmatpush.bf16.msra.mxu1 %v1898_v2  ;;  %v1896_v5 = vld [vmem:[#allocation5 + $0x68] sm:$0xff]  ;;  %v1887_v6 = vld [vmem:[#allocation5 + $0x20] sm:$0xff]  ;;  %v1886_v8 = vld [vmem:[#allocation5 + $0x18] sm:$0xff] }
  0x11   :  { %v1895_v7 = vld [vmem:[#allocation5 + $0x60] sm:$0xff]  ;;  %v1894_v9 = vld [vmem:[#allocation5 + $0x58] sm:$0xff]  ;;  %v1885_v10 = vld [vmem:[#allocation5 + $0x10] sm:$0xff] }
  0x12   :  { %v1893_v11 = vld [vmem:[#allocation5 + $0x50] sm:$0xff]  ;;  %v1884_v12 = vld [vmem:[#allocation5 + $0x8] sm:$0xff]  ;;  %v1883_v13 = vld [vmem:[#allocation5] sm:$0xff] }
  0x13   :  { %134 = vmatpush.bf16.msra.mxu0 %v1889_v1  ;;  %v60_v14 = vld [vmem:[#allocation2] sm:$0xff]  ;;  %v1892_v16 = vld [vmem:[#allocation5 + $0x48] sm:$0xff]  ;;  %v1891_v17 = vld [vmem:[#allocation5 + $0x40] sm:$0xff] }
  0x14   :  { %221 = vmatpush.bf16.msra.mxu1 %v1897_v4  ;;  %v64_v15 = vpack.c.bf16 %v60_v14, %v60_v14  ;;  %v1906_v18 = vld [vmem:[#allocation5 + $0xb8] sm:$0xff]  ;;  %v1905_v19 = vld [vmem:[#allocation5 + $0xb0] sm:$0xff]  ;;  %v1904_v20 = vld [vmem:[#allocation5 + $0xa8] sm:$0xff] }
  0x15   :  { %308 = vmatpush.bf16.msra.mxu2 %v1906_v18  ;;  %v1903_v21 = vld [vmem:[#allocation5 + $0xa0] sm:$0xff]  ;;  %v1902_v22 = vld [vmem:[#allocation5 + $0x98] sm:$0xff]  ;;  %v1901_v23 = vld [vmem:[#allocation5 + $0x90] sm:$0xff] }
  0x16   :  { %v2011_v24 = vld [vmem:[#allocation7] ss:$0 sm:$0xff]  ;;  %v1900_v31 = vld [vmem:[#allocation5 + $0x88] sm:$0xff]  ;;  %v1914_v33 = vld [vmem:[#allocation5 + $0xf8] sm:$0xff] }
  0x17   :  { %135 = vmatpush.bf16.msra.mxu0 %v1888_v3  ;;  %v1899_v32 = vld [vmem:[#allocation5 + $0x80] sm:$0xff]  ;;  %395 = vmatpush.bf16.msra.mxu3 %v1914_v33  ;;  %v1913_v34 = vld [vmem:[#allocation5 + $0xf0] sm:$0xff]  ;;  %v1912_v35 = vld [vmem:[#allocation5 + $0xe8] sm:$0xff] }
  0x18   :  { %222 = vmatpush.bf16.msra.mxu1 %v1896_v5  ;;  %v1911_v36 = vld [vmem:[#allocation5 + $0xe0] sm:$0xff]  ;;  %v1910_v37 = vld [vmem:[#allocation5 + $0xd8] sm:$0xff]  ;;  %v1909_v38 = vld [vmem:[#allocation5 + $0xd0] sm:$0xff] }
  0x19   :  { %309 = vmatpush.bf16.msra.mxu2 %v1905_v19  ;;  %v2012_v39 = vld [vmem:[#allocation7 + $0x1] ss:$0 sm:$0xff]  ;;  %v1908_v47 = vld [vmem:[#allocation5 + $0xc8] sm:$0xff]  ;;  %v1922_v49 = vld [vmem:[#allocation5 + $0x138] sm:$0xff] }
  0x1a   :  { %v1907_v48 = vld [vmem:[#allocation5 + $0xc0] sm:$0xff]  ;;  %v1921_v50 = vld [vmem:[#allocation5 + $0x130] sm:$0xff]  ;;  %v1920_v51 = vld [vmem:[#allocation5 + $0x128] sm:$0xff] }
  0x1b   :  { %136 = vmatpush.bf16.msra.mxu0 %v1887_v6  ;;  %396 = vmatpush.bf16.msra.mxu3 %v1913_v34  ;;  %v1919_v52 = vld [vmem:[#allocation5 + $0x120] sm:$0xff]  ;;  %v1918_v53 = vld [vmem:[#allocation5 + $0x118] sm:$0xff]  ;;  %v1917_v54 = vld [vmem:[#allocation5 + $0x110] sm:$0xff] }
  0x1c   :  { %223 = vmatpush.bf16.msra.mxu1 %v1895_v7  ;;  %v2013_v55 = vld [vmem:[#allocation7 + $0x2] ss:$0 sm:$0xff]  ;;  %v1916_v62 = vld [vmem:[#allocation5 + $0x108] sm:$0xff]  ;;  %v1930_v0 = vld [vmem:[#allocation5 + $0x178] sm:$0xff] }
  0x1d   :  { %310 = vmatpush.bf16.msra.mxu2 %v1904_v20  ;;  %v1915_v63 = vld [vmem:[#allocation5 + $0x100] sm:$0xff]  ;;  %v1929_v1 = vld [vmem:[#allocation5 + $0x170] sm:$0xff]  ;;  %v1928_v2 = vld [vmem:[#allocation5 + $0x168] sm:$0xff] }
  0x1e   :  { %v1927_v3 = vld [vmem:[#allocation5 + $0x160] sm:$0xff]  ;;  %v1926_v4 = vld [vmem:[#allocation5 + $0x158] sm:$0xff]  ;;  %v1925_v5 = vld [vmem:[#allocation5 + $0x150] sm:$0xff] }
  0x1f   :  { %137 = vmatpush.bf16.msra.mxu0 %v1886_v8  ;;  %397 = vmatpush.bf16.msra.mxu3 %v1912_v35  ;;  %v2014_v6 = vld [vmem:[#allocation7 + $0x3] ss:$0 sm:$0xff]  ;;  %v1936_v18 = vld [vmem:[#allocation5 + $0x1a8] sm:$0xff]  ;;  %v1934_v20 = vld [vmem:[#allocation5 + $0x198] sm:$0xff] }
  0x20   :  { %224 = vmatpush.bf16.msra.mxu1 %v1894_v9  ;;  %v1935_v19 = vld [vmem:[#allocation5 + $0x1a0] sm:$0xff]  ;;  %v1946_v34 = vld [vmem:[#allocation5 + $0x1f8] sm:$0xff]  ;;  %v1945_v35 = vld [vmem:[#allocation5 + $0x1f0] sm:$0xff] }
  0x21   :  { %311 = vmatpush.bf16.msra.mxu2 %v1903_v21  ;;  %v61_v21 = vlaneseq  ;;  %v1931_v33 = vld [vmem:[#allocation5 + $0x180] sm:$0xff] }
  0x23   :  { %138 = vmatpush.bf16.msra.mxu0 %v1885_v10  ;;  %398 = vmatpush.bf16.msra.mxu3 %v1911_v36  ;;  %v1944_v36 = vld [vmem:[#allocation5 + $0x1e8] sm:$0xff] }
  0x24   :  { %225 = vmatpush.bf16.msra.mxu1 %v1893_v11 }
  0x25   :  { %312 = vmatpush.bf16.msra.mxu2 %v1902_v22  ;;  %v1933_v22 = vld [vmem:[#allocation5 + $0x190] sm:$0xff] }
  0x27   :  { %139 = vmatpush.bf16.msra.mxu0 %v1884_v12  ;;  %399 = vmatpush.bf16.msra.mxu3 %v1910_v37  ;;  %v1943_v37 = vld [vmem:[#allocation5 + $0x1e0] sm:$0xff] }
  0x28   :  { %226 = vmatpush.bf16.msra.mxu1 %v1892_v16  ;;  %v1938_v16 = vld [vmem:[#allocation5 + $0x1b8] sm:$0xff] }
  0x29   :  { %313 = vmatpush.bf16.msra.mxu2 %v1901_v23  ;;  %v2015_v23 = vld [vmem:[#allocation7 + $0x4] ss:$0 sm:$0xff] }
  0x2b   :  { %140 = vmatpush.bf16.msra.mxu0 %v1883_v13  ;;  %400 = vmatpush.bf16.msra.mxu3 %v1909_v38  ;;  %v1942_v38 = vld [vmem:[#allocation5 + $0x1d8] sm:$0xff] }
  0x2c   :  { %227 = vmatpush.bf16.msra.mxu1 %v1891_v17  ;;  %v1937_v17 = vld [vmem:[#allocation5 + $0x1b0] sm:$0xff] }
  0x2d   :  { %314 = vmatpush.bf16.msra.mxu2 %v1900_v31 }
  0x2e   :  { %141 = vmatmul.bf16.vlgmr.msra.gmra.mxu0 %v64_v15  ;;  %v1923_v15 = vld [vmem:[#allocation5 + $0x140] sm:$0xff] }
  0x2f   :  { %401 = vmatpush.bf16.msra.mxu3 %v1908_v47  ;;  %483 = vmatpush.bf16.msrb.mxu0 %v1922_v49  ;;  %v1939_v49 = vld [vmem:[#allocation5 + $0x1c0] sm:$0xff] }
  0x30   :  { %571 = vmatpush.bf16.msrb.mxu1 %v1930_v0  ;;  %v1947_v0 = vld [vmem:[#allocation5 + $0x200] sm:$0xff] }
  0x31   :  { %315 = vmatpush.bf16.msra.mxu2 %v1899_v32  ;;  %v1932_v32 = vld [vmem:[#allocation5 + $0x188] sm:$0xff] }
  0x33   :  { %402 = vmatpush.bf16.msra.mxu3 %v1907_v48  ;;  %484 = vmatpush.bf16.msrb.mxu0 %v1921_v50  ;;  %v1940_v48 = vld [vmem:[#allocation5 + $0x1c8] sm:$0xff]  ;;  %v1954_v50 = vld [vmem:[#allocation5 + $0x238] sm:$0xff] }
  0x34   :  { %572 = vmatpush.bf16.msrb.mxu1 %v1929_v1  ;;  %v1962_v1 = vld [vmem:[#allocation5 + $0x278] sm:$0xff] }
  0x35   :  { %659 = vmatpush.bf16.msrb.mxu2 %v1938_v16  ;;  %v1955_v16 = vld [vmem:[#allocation5 + $0x240] sm:$0xff] }
  0x37   :  { %485 = vmatpush.bf16.msrb.mxu0 %v1920_v51  ;;  %746 = vmatpush.bf16.msrb.mxu3 %v1946_v34  ;;  %v1953_v51 = vld [vmem:[#allocation5 + $0x230] sm:$0xff] }
  0x38   :  { %573 = vmatpush.bf16.msrb.mxu1 %v1928_v2  ;;  %v1961_v2 = vld [vmem:[#allocation5 + $0x270] sm:$0xff] }
  0x39   :  { %660 = vmatpush.bf16.msrb.mxu2 %v1937_v17  ;;  %v1970_v17 = vld [vmem:[#allocation5 + $0x2b8] sm:$0xff]  ;;  %v1977_v34 = vld [vmem:[#allocation5 + $0x2f0] sm:$0xff] }
  0x3b   :  { %486 = vmatpush.bf16.msrb.mxu0 %v1919_v52  ;;  %747 = vmatpush.bf16.msrb.mxu3 %v1945_v35  ;;  %v1952_v52 = vld [vmem:[#allocation5 + $0x228] sm:$0xff] }
  0x3c   :  { %574 = vmatpush.bf16.msrb.mxu1 %v1927_v3  ;;  %v1960_v3 = vld [vmem:[#allocation5 + $0x268] sm:$0xff] }
  0x3d   :  { %661 = vmatpush.bf16.msrb.mxu2 %v1936_v18  ;;  %v1969_v18 = vld [vmem:[#allocation5 + $0x2b0] sm:$0xff]  ;;  %v1976_v35 = vld [vmem:[#allocation5 + $0x2e8] sm:$0xff] }
  0x3f   :  { %487 = vmatpush.bf16.msrb.mxu0 %v1918_v53  ;;  %748 = vmatpush.bf16.msrb.mxu3 %v1944_v36  ;;  %v1951_v53 = vld [vmem:[#allocation5 + $0x220] sm:$0xff] }
  0x40   :  { %575 = vmatpush.bf16.msrb.mxu1 %v1926_v4  ;;  %v1959_v4 = vld [vmem:[#allocation5 + $0x260] sm:$0xff] }
  0x41   :  { %662 = vmatpush.bf16.msrb.mxu2 %v1935_v19  ;;  %v1968_v19 = vld [vmem:[#allocation5 + $0x2a8] sm:$0xff]  ;;  %v1975_v36 = vld [vmem:[#allocation5 + $0x2e0] sm:$0xff] }
  0x43   :  { %488 = vmatpush.bf16.msrb.mxu0 %v1917_v54  ;;  %749 = vmatpush.bf16.msrb.mxu3 %v1943_v37  ;;  %v1950_v54 = vld [vmem:[#allocation5 + $0x218] sm:$0xff] }
  0x44   :  { %576 = vmatpush.bf16.msrb.mxu1 %v1925_v5  ;;  %v1958_v5 = vld [vmem:[#allocation5 + $0x258] sm:$0xff] }
  0x45   :  { %663 = vmatpush.bf16.msrb.mxu2 %v1934_v20  ;;  %v1967_v20 = vld [vmem:[#allocation5 + $0x2a0] sm:$0xff]  ;;  %v1974_v37 = vld [vmem:[#allocation5 + $0x2d8] sm:$0xff] }
  0x47   :  { %489 = vmatpush.bf16.msrb.mxu0 %v1916_v62  ;;  %750 = vmatpush.bf16.msrb.mxu3 %v1942_v38  ;;  %v1973_v38 = vld [vmem:[#allocation5 + $0x2d0] sm:$0xff] }
  0x49   :  { %664 = vmatpush.bf16.msrb.mxu2 %v1933_v22  ;;  %v1965_v22 = vld [vmem:[#allocation5 + $0x290] sm:$0xff] }
  0x4b   :  { %490 = vmatpush.bf16.msrb.mxu0 %v1915_v63  ;;  %v1948_v63 = vld [vmem:[#allocation5 + $0x208] sm:$0xff] }
  0x4d   :  { %665 = vmatpush.bf16.msrb.mxu2 %v1932_v32  ;;  %v1963_v32 = vld [vmem:[#allocation5 + $0x280] sm:$0xff] }
  0x4f   :  { %834 = vmatpush.bf16.msra.mxu0 %v1954_v50  ;;  %v1985_v50 = vld [vmem:[#allocation5 + $0x330] sm:$0xff] }
  0x51   :  { %666 = vmatpush.bf16.msrb.mxu2 %v1931_v33  ;;  %v1978_v33 = vld [vmem:[#allocation5 + $0x2f8] sm:$0xff] }
  0x53   :  { %835 = vmatpush.bf16.msra.mxu0 %v1953_v51  ;;  %v1984_v51 = vld [vmem:[#allocation5 + $0x328] sm:$0xff] }
  0x57   :  { %836 = vmatpush.bf16.msra.mxu0 %v1952_v52  ;;  %v1983_v52 = vld [vmem:[#allocation5 + $0x320] sm:$0xff] }
  0x5b   :  { %837 = vmatpush.bf16.msra.mxu0 %v1951_v53  ;;  %v1982_v53 = vld [vmem:[#allocation5 + $0x318] sm:$0xff] }
  0x5f   :  { %838 = vmatpush.bf16.msra.mxu0 %v1950_v54  ;;  %v1981_v54 = vld [vmem:[#allocation5 + $0x310] sm:$0xff] }
  0xab   :  { %v142_v25 = vpop.f32.mrf.mxu0 }
  0xac   :  { %v143_v26 = vadd.f32 %v2011_v24, %v142_v25  ;;  %v2169_v24 = vand.u32 127, %v61_v21  ;;  %v1966_v21 = vld [vmem:[#allocation5 + $0x298] sm:$0xff] }
  0xae   :  { %v147_v27 = vmul.f32 0.05, %v143_v26  ;;  %vm146_vm0 = vcmp.gt.f32.partialorder %v143_v26, 0.0  ;;  %vm63_vm5 = vcmp.lt.s32.totalorder %v2169_v24, 64  ;;  %v2022_v24 = vld [vmem:[#allocation7 + $0xb] ss:$0 sm:$0xff] }
  0xb0   :  { %v148_v28 = vsel %vm146_vm0, %v143_v26, %v147_v27 }
  0xb1   :  { %v149_v29 = vpack.c.bf16 %v148_v28, %v148_v28 }
  0xb3   :  { %v144_v30 = vpop.f32.mrf.mxu0  ;;  %228 = vmatmul.bf16.vlgmr.msra.gmra.mxu1 %v149_v29 }
 0x130   :  { %v229_v40 = vpop.f32.mrf.mxu1 }
 0x131   :  { %v230_v41 = vadd.f32 %v2012_v39, %v229_v40  ;;  %v1941_v39 = vld [vmem:[#allocation5 + $0x1d0] sm:$0xff]  ;;  %v2016_v40 = vld [vmem:[#allocation7 + $0x5] ss:$0 sm:$0xff] }
 0x132   :  { %751 = vmatpush.bf16.msrb.mxu3 %v1941_v39  ;;  %v2020_v39 = vld [vmem:[#allocation7 + $0x9] ss:$0 sm:$0xff] }
 0x133   :  { %v233_v42 = vadd.f32 %v230_v41, %v60_v14  ;;  %v1924_v14 = vld [vmem:[#allocation5 + $0x148] sm:$0xff] }
 0x134   :  { %577 = vmatpush.bf16.msrb.mxu1 %v1924_v14 }
 0x135   :  { %vm234_vm1 = vcmp.gt.f32.partialorder %v233_v42, 0.0  ;;  %v235_v43 = vmul.f32 0.05, %v233_v42 }
 0x136   :  { %752 = vmatpush.bf16.msrb.mxu3 %v1940_v48  ;;  %v1971_v48 = vld [vmem:[#allocation5 + $0x2c0] sm:$0xff] }
 0x137   :  { %v236_v44 = vsel %vm234_vm1, %v233_v42, %v235_v43 }
 0x138   :  { %v231_v45 = vpop.f32.mrf.mxu1  ;;  %v237_v46 = vpack.c.bf16 %v236_v44, %v236_v44  ;;  %578 = vmatpush.bf16.msrb.mxu1 %v1923_v15  ;;  %v1956_v15 = vld [vmem:[#allocation5 + $0x248] sm:$0xff] }
 0x13a   :  { %316 = vmatmul.bf16.vlgmr.msra.gmra.mxu2 %v237_v46  ;;  %753 = vmatpush.bf16.msrb.mxu3 %v1939_v49  ;;  %v1986_v49 = vld [vmem:[#allocation5 + $0x338] sm:$0xff] }
 0x13b   :  { %1009 = vmatpush.bf16.msra.mxu2 %v1970_v17  ;;  %v2001_v17 = vld [vmem:[#allocation5 + $0x3b0] sm:$0xff] }
 0x13c   :  { %921 = vmatpush.bf16.msra.mxu1 %v1962_v1  ;;  %v1994_v1 = vld [vmem:[#allocation5 + $0x378] sm:$0xff] }
 0x13f   :  { %1010 = vmatpush.bf16.msra.mxu2 %v1969_v18  ;;  %v2000_v18 = vld [vmem:[#allocation5 + $0x3a8] sm:$0xff] }
 0x140   :  { %922 = vmatpush.bf16.msra.mxu1 %v1961_v2  ;;  %v1993_v2 = vld [vmem:[#allocation5 + $0x370] sm:$0xff] }
 0x143   :  { %1011 = vmatpush.bf16.msra.mxu2 %v1968_v19  ;;  %v1999_v19 = vld [vmem:[#allocation5 + $0x3a0] sm:$0xff] }
 0x144   :  { %923 = vmatpush.bf16.msra.mxu1 %v1960_v3  ;;  %v1992_v3 = vld [vmem:[#allocation5 + $0x368] sm:$0xff] }
 0x147   :  { %1012 = vmatpush.bf16.msra.mxu2 %v1967_v20  ;;  %v1998_v20 = vld [vmem:[#allocation5 + $0x398] sm:$0xff] }
 0x148   :  { %924 = vmatpush.bf16.msra.mxu1 %v1959_v4  ;;  %v1991_v4 = vld [vmem:[#allocation5 + $0x360] sm:$0xff] }
 0x14b   :  { %1013 = vmatpush.bf16.msra.mxu2 %v1966_v21  ;;  %v1997_v21 = vld [vmem:[#allocation5 + $0x390] sm:$0xff] }
 0x14c   :  { %925 = vmatpush.bf16.msra.mxu1 %v1958_v5  ;;  %v1990_v5 = vld [vmem:[#allocation5 + $0x358] sm:$0xff] }
 0x14f   :  { %1014 = vmatpush.bf16.msra.mxu2 %v1965_v22  ;;  %v2023_v22 = vld [vmem:[#allocation7 + $0xc] ss:$0 sm:$0xff] }
 0x1bd   :  { %v317_v56 = vpop.f32.mrf.mxu2 }
 0x1be   :  { %v318_v57 = vadd.f32 %v2013_v55, %v317_v56  ;;  %v1949_v55 = vld [vmem:[#allocation5 + $0x210] sm:$0xff]  ;;  %v2017_v56 = vld [vmem:[#allocation7 + $0x6] ss:$0 sm:$0xff] }
 0x1bf   :  { %839 = vmatpush.bf16.msra.mxu0 %v1949_v55  ;;  %v2021_v55 = vld [vmem:[#allocation7 + $0xa] ss:$0 sm:$0xff] }
 0x1c0   :  { %v322_v58 = vmul.f32 0.05, %v318_v57  ;;  %vm321_vm2 = vcmp.gt.f32.partialorder %v318_v57, 0.0 }
 0x1c2   :  { %v323_v59 = vsel %vm321_vm2, %v318_v57, %v322_v58 }
 0x1c3   :  { %v324_v60 = vpack.c.bf16 %v323_v59, %v323_v59  ;;  %840 = vmatpush.bf16.msra.mxu0 %v1948_v63  ;;  %v1980_v63 = vld [vmem:[#allocation5 + $0x308] sm:$0xff] }
 0x1c5   :  { %v319_v61 = vpop.f32.mrf.mxu2  ;;  %403 = vmatmul.bf16.vlgmr.msra.gmra.mxu3 %v324_v60 }
 0x1c6   :  { %1097 = vmatpush.bf16.msra.mxu3 %v1978_v33 }
 0x1c7   :  { %841 = vmatpush.bf16.msra.mxu0 %v1947_v0  ;;  %v1979_v0 = vld [vmem:[#allocation5 + $0x300] sm:$0xff] }
 0x1ca   :  { %1098 = vmatpush.bf16.msra.mxu3 %v1977_v34 }
 0x1ce   :  { %1099 = vmatpush.bf16.msra.mxu3 %v1976_v35 }
 0x1d2   :  { %1100 = vmatpush.bf16.msra.mxu3 %v1975_v36 }
 0x1d6   :  { %1101 = vmatpush.bf16.msra.mxu3 %v1974_v37 }
 0x1da   :  { %1102 = vmatpush.bf16.msra.mxu3 %v1973_v38 }
 0x248   :  { %v404_v7 = vpop.f32.mrf.mxu3 }
 0x249   :  { %v405_v8 = vadd.f32 %v2014_v6, %v404_v7  ;;  %v1957_v6 = vld [vmem:[#allocation5 + $0x250] sm:$0xff]  ;;  %v2018_v7 = vld [vmem:[#allocation7 + $0x7] ss:$0 sm:$0xff] }
 0x24a   :  { %926 = vmatpush.bf16.msra.mxu1 %v1957_v6  ;;  %v1989_v6 = vld [vmem:[#allocation5 + $0x350] sm:$0xff] }
 0x24b   :  { %v408_v9 = vadd.f32 %v405_v8, %v236_v44 }
 0x24d   :  { %v410_v10 = vmul.f32 0.05, %v408_v9  ;;  %vm409_vm3 = vcmp.gt.f32.partialorder %v408_v9, 0.0 }
 0x24e   :  { %927 = vmatpush.bf16.msra.mxu1 %v1956_v15  ;;  %v1987_v15 = vld [vmem:[#allocation5 + $0x340] sm:$0xff] }
 0x24f   :  { %v411_v11 = vsel %vm409_vm3, %v408_v9, %v410_v10 }
 0x250   :  { %v406_v12 = vpop.f32.mrf.mxu3  ;;  %v412_v13 = vpack.c.bf16 %v411_v11, %v411_v11 }
 0x252   :  { %491 = vmatmul.bf16.vlgmr.msrb.gmra.mxu0 %v412_v13  ;;  %928 = vmatpush.bf16.msra.mxu1 %v1955_v16  ;;  %v2002_v16 = vld [vmem:[#allocation5 + $0x3b8] sm:$0xff] }
 0x253   :  { %1185 = vmatpush.bf16.msrb.mxu0 %v1986_v49 }
 0x257   :  { %1186 = vmatpush.bf16.msrb.mxu0 %v1985_v50 }
 0x25b   :  { %1187 = vmatpush.bf16.msrb.mxu0 %v1984_v51 }
 0x25f   :  { %1188 = vmatpush.bf16.msrb.mxu0 %v1983_v52 }
 0x263   :  { %1189 = vmatpush.bf16.msrb.mxu0 %v1982_v53 }
 0x267   :  { %1190 = vmatpush.bf16.msrb.mxu0 %v1981_v54 }
 0x26b   :  { %1191 = vmatpush.bf16.msrb.mxu0 %v1980_v63 }
 0x26f   :  { %1192 = vmatpush.bf16.msrb.mxu0 %v1979_v0 }
 0x2cf   :  { %v492_v25 = vpop.f32.mrf.mxu0 }
 0x2d0   :  { %v493_v26 = vadd.f32 %v2015_v23, %v492_v25  ;;  %v2019_v23 = vld [vmem:[#allocation7 + $0x8] ss:$0 sm:$0xff] }
 0x2d2   :  { %vm496_vm4 = vcmp.gt.f32.partialorder %v493_v26, 0.0  ;;  %v497_v27 = vmul.f32 0.05, %v493_v26 }
 0x2d4   :  { %v498_v28 = vsel %vm496_vm4, %v493_v26, %v497_v27 }
 0x2d5   :  { %v499_v29 = vsel %vm63_vm5, %v498_v28, %v493_v26 }
 0x2d6   :  { %v500_v30 = vpack.c.bf16 %v499_v29, %v499_v29 }
 0x2d7   :  { %v494_v31 = vpop.f32.mrf.mxu0 }
 0x2d8   :  { %579 = vmatmul.bf16.vlgmr.msrb.gmra.mxu1 %v500_v30  ;;  %v1964_v31 = vld [vmem:[#allocation5 + $0x288] sm:$0xff] }
 0x2d9   :  { %1015 = vmatpush.bf16.msra.mxu2 %v1964_v31  ;;  %1272 = vmatpush.bf16.msrb.mxu1 %v1994_v1  ;;  %v1995_v31 = vld [vmem:[#allocation5 + $0x380] sm:$0xff] }
 0x2dd   :  { %1016 = vmatpush.bf16.msra.mxu2 %v1963_v32  ;;  %1273 = vmatpush.bf16.msrb.mxu1 %v1993_v2  ;;  %v2024_v32 = vld [vmem:[#allocation7 + $0xd] ss:$0 sm:$0xff] }
 0x2e1   :  { %1274 = vmatpush.bf16.msrb.mxu1 %v1992_v3 }
 0x2e5   :  { %1275 = vmatpush.bf16.msrb.mxu1 %v1991_v4 }
 0x2e9   :  { %1276 = vmatpush.bf16.msrb.mxu1 %v1990_v5 }
 0x2ed   :  { %1277 = vmatpush.bf16.msrb.mxu1 %v1989_v6 }
 0x355   :  { %v580_v41 = vpop.f32.mrf.mxu1 }
 0x356   :  { %v581_v42 = vadd.f32 %v2016_v40, %v580_v41 }
 0x358   :  { %v584_v43 = vadd.f32 %v581_v42, %v499_v29 }
 0x35a   :  { %vm585_vm6 = vcmp.gt.f32.partialorder %v584_v43, 0.0  ;;  %v586_v44 = vmul.f32 0.05, %v584_v43 }
 0x35c   :  { %v587_v45 = vsel %vm585_vm6, %v584_v43, %v586_v44 }
 0x35d   :  { %v582_v46 = vpop.f32.mrf.mxu1  ;;  %v588_v47 = vpack.c.bf16 %v587_v45, %v587_v45 }
 0x35f   :  { %667 = vmatmul.bf16.vlgmr.msrb.gmra.mxu2 %v588_v47  ;;  %v1972_v47 = vld [vmem:[#allocation5 + $0x2c8] sm:$0xff] }
 0x360   :  { %1103 = vmatpush.bf16.msra.mxu3 %v1972_v47  ;;  %1359 = vmatpush.bf16.msrb.mxu2 %v2002_v16 }
 0x364   :  { %1104 = vmatpush.bf16.msra.mxu3 %v1971_v48  ;;  %1360 = vmatpush.bf16.msrb.mxu2 %v2001_v17 }
 0x368   :  { %1361 = vmatpush.bf16.msrb.mxu2 %v2000_v18 }
 0x36c   :  { %1362 = vmatpush.bf16.msrb.mxu2 %v1999_v19 }
 0x370   :  { %1363 = vmatpush.bf16.msrb.mxu2 %v1998_v20 }
 0x374   :  { %1364 = vmatpush.bf16.msrb.mxu2 %v1997_v21 }
 0x3e2   :  { %v668_v57 = vpop.f32.mrf.mxu2 }
 0x3e3   :  { %v669_v58 = vadd.f32 %v2017_v56, %v668_v57 }
 0x3e5   :  { %vm672_vm7 = vcmp.gt.f32.partialorder %v669_v58, 0.0  ;;  %v673_v59 = vmul.f32 0.05, %v669_v58 }
 0x3e7   :  { %v674_v60 = vsel %vm672_vm7, %v669_v58, %v673_v59 }
 0x3e8   :  { %v675_v61 = vpack.c.bf16 %v674_v60, %v674_v60 }
 0x3ea   :  { %v670_v62 = vpop.f32.mrf.mxu2  ;;  %754 = vmatmul.bf16.vlgmr.msrb.gmra.mxu3 %v675_v61 }
 0x46d   :  { %v755_v8 = vpop.f32.mrf.mxu3 }
 0x46e   :  { %v756_v9 = vadd.f32 %v2018_v7, %v755_v8 }
 0x470   :  { %v759_v10 = vadd.f32 %v756_v9, %v587_v45 }
 0x472   :  { %vm760_vm8 = vcmp.gt.f32.partialorder %v759_v10, 0.0  ;;  %v761_v11 = vmul.f32 0.05, %v759_v10 }
 0x474   :  { %v762_v12 = vsel %vm760_vm8, %v759_v10, %v761_v11 }
 0x475   :  { %v757_v13 = vpop.f32.mrf.mxu3  ;;  %v763_v14 = vpack.c.bf16 %v762_v12, %v762_v12 }
 0x477   :  { %842 = vmatmul.bf16.vlgmr.msra.gmra.mxu0 %v763_v14  ;;  %v1988_v14 = vld [vmem:[#allocation5 + $0x348] sm:$0xff] }
 0x478   :  { %1278 = vmatpush.bf16.msrb.mxu1 %v1988_v14 }
 0x47c   :  { %1279 = vmatpush.bf16.msrb.mxu1 %v1987_v15 }
 0x4f4   :  { %v843_v25 = vpop.f32.mrf.mxu0 }
 0x4f5   :  { %v844_v26 = vadd.f32 %v2019_v23, %v843_v25 }
 0x4f7   :  { %vm847_vm9 = vcmp.gt.f32.partialorder %v844_v26, 0.0  ;;  %v848_v27 = vmul.f32 0.05, %v844_v26 }
 0x4f9   :  { %v849_v28 = vsel %vm847_vm9, %v844_v26, %v848_v27 }
 0x4fa   :  { %v850_v29 = vpack.c.bf16 %v849_v28, %v849_v28 }
 0x4fc   :  { %v845_v30 = vpop.f32.mrf.mxu0  ;;  %929 = vmatmul.bf16.vlgmr.msra.gmra.mxu1 %v850_v29 }
 0x4fd   :  { %v1996_v30 = vld [vmem:[#allocation5 + $0x388] sm:$0xff] }
 0x4fe   :  { %1365 = vmatpush.bf16.msrb.mxu2 %v1996_v30 }
 0x502   :  { %1366 = vmatpush.bf16.msrb.mxu2 %v1995_v31 }
 0x579   :  { %v930_v40 = vpop.f32.mrf.mxu1 }
 0x57a   :  { %v931_v41 = vadd.f32 %v2020_v39, %v930_v40  ;;  %v2025_v39 = vld [vmem:[#allocation7 + $0xe] ss:$0 sm:$0xff] }
 0x57c   :  { %v934_v42 = vadd.f32 %v931_v41, %v762_v12 }
 0x57e   :  { %vm935_vm10 = vcmp.gt.f32.partialorder %v934_v42, 0.0  ;;  %v936_v43 = vmul.f32 0.05, %v934_v42 }
 0x580   :  { %v937_v44 = vsel %vm935_vm10, %v934_v42, %v936_v43 }
 0x581   :  { %v938_v45 = vpack.c.bf16 %v937_v44, %v937_v44  ;;  %v932_v46 = vpop.f32.mrf.mxu1 }
 0x583   :  { %1017 = vmatmul.bf16.vlgmr.msra.gmra.mxu2 %v938_v45 }
 0x606   :  { %v1018_v56 = vpop.f32.mrf.mxu2 }
 0x607   :  { %v1019_v57 = vadd.f32 %v2021_v55, %v1018_v56 }
 0x609   :  { %vm1022_vm11 = vcmp.gt.f32.partialorder %v1019_v57, 0.0  ;;  %v1023_v58 = vmul.f32 0.05, %v1019_v57 }
 0x60b   :  { %v1024_v59 = vsel %vm1022_vm11, %v1019_v57, %v1023_v58 }
 0x60c   :  { %v1025_v60 = vsel %vm63_vm5, %v1024_v59, %v1019_v57 }
 0x60d   :  { %v1026_v61 = vpack.c.bf16 %v1025_v60, %v1025_v60 }
 0x60e   :  { %v1020_v62 = vpop.f32.mrf.mxu2 }
 0x60f   :  { %1105 = vmatmul.bf16.vlgmr.msra.gmra.mxu3 %v1026_v61 }
 0x692   :  { %v1106_v7 = vpop.f32.mrf.mxu3 }
 0x693   :  { %v1107_v8 = vadd.f32 %v2022_v24, %v1106_v7 }
 0x695   :  { %v1110_v9 = vadd.f32 %v1107_v8, %v1025_v60 }
 0x697   :  { %vm1111_vm12 = vcmp.gt.f32.partialorder %v1110_v9, 0.0  ;;  %v1112_v10 = vmul.f32 0.05, %v1110_v9 }
 0x699   :  { %v1113_v11 = vsel %vm1111_vm12, %v1110_v9, %v1112_v10 }
 0x69a   :  { %v1114_v12 = vpack.c.bf16 %v1113_v11, %v1113_v11  ;;  %v1108_v13 = vpop.f32.mrf.mxu3 }
 0x69c   :  { %1193 = vmatmul.bf16.vlgmr.msrb.gmra.mxu0 %v1114_v12 }
 0x719   :  { %v1194_v23 = vpop.f32.mrf.mxu0 }
 0x71a   :  { %v1195_v25 = vadd.f32 %v2023_v22, %v1194_v23 }
 0x71c   :  { %vm1198_vm13 = vcmp.gt.f32.partialorder %v1195_v25, 0.0  ;;  %v1199_v26 = vmul.f32 0.05, %v1195_v25 }
 0x71e   :  { %v1200_v27 = vsel %vm1198_vm13, %v1195_v25, %v1199_v26 }
 0x71f   :  { %v1201_v28 = vpack.c.bf16 %v1200_v27, %v1200_v27 }
 0x721   :  { %v1196_v29 = vpop.f32.mrf.mxu0  ;;  %1280 = vmatmul.bf16.vlgmr.msrb.gmra.mxu1 %v1201_v28 }
 0x79e   :  { %v1281_v33 = vpop.f32.mrf.mxu1 }
 0x79f   :  { %v1282_v34 = vadd.f32 %v2024_v32, %v1281_v33 }
 0x7a1   :  { %vm1285_vm14 = vcmp.gt.f32.partialorder %v1282_v34, 0.0  ;;  %v1286_v35 = vmul.f32 0.05, %v1282_v34 }
 0x7a3   :  { %v1287_v36 = vsel %vm1285_vm14, %v1282_v34, %v1286_v35 }
 0x7a4   :  { %v1288_v37 = vpack.c.bf16 %v1287_v36, %v1287_v36 }
 0x7a6   :  { %v1283_v38 = vpop.f32.mrf.mxu1  ;;  %1367 = vmatmul.bf16.vlgmr.msrb.gmra.mxu2 %v1288_v37 }
 0x829   :  { %v1368_v40 = vpop.f32.mrf.mxu2 }
 0x82a   :  { %v1369_v41 = vadd.f32 %v2025_v39, %v1368_v40 }
 0x82c   :  { %1372 = vmax.xlane.f32.xlu0 %v1369_v41 }
 0x831   :  { %v1370_v42 = vpop.f32.mrf.mxu2 }
 0x89f   :  { %v1373_v43 = vpop.xlane.xlu0 %1372 }
 0x8a0   :  { %v1374_v44 = vsub.f32 %v1369_v41, %v1373_v43 }
 0x8a2   :  { %v1375_v45 = vmul.f32 1.442695, %v1374_v44 }
 0x8a4   :  { %2026 = vpow2.f32 %v1375_v45 }
 0x8aa   :  { %v2027_v46 = vpop.eup %2026 }
 0x8ab   :  { %1377 = vadd.xlane.f32.xlu0 %v2027_v46 }
 0x91e   :  { %v1378_v47 = vpop.xlane.xlu0 %1377 }
 0x91f   :  { %2028 = vrcp.f32 %v1378_v47 }
 0x925   :  { %v2029_v48 = vpop.eup %2028 }
 0x926   :  { %v1380_v49 = vmul.f32 %v2029_v48, %v1378_v47 }
 0x928   :  { %v1381_v50 = vsub.f32 2.0, %v1380_v49 }
 0x92a   :  { %v1382_v51 = vmul.f32 %v2029_v48, %v1381_v50 }
 0x92c   :  { %v1383_v52 = vmul.f32 %v2027_v46, %v1382_v51 }
 0x92e   :  { %1384 = vst [vmem:[#allocation8] sm:$0xff] %v1383_v52 }
 0x92f   :  { %1395 = dma.vmem_to_hbm [thread:$0]  %s1391_s2, 128, %s1393_s5, [#allocation4]  }
 0x930   :  { %2130 = dma.done.wait [#allocation4], 128  }
 0x931   :  { %2131 = vsyncadd [#allocation4], 4294967168 }
 0x932   :  { %1400 = vsyncpa [#allocation3], 1 }
 0x933   :  { %1401 = vsyncpa [#allocation6], 1 }
 0x934   :  { %1402 = vsyncpa [#allocation4], 1 }

// kernel: tpu_custom_call.1
= control target key start
LH: loop header
LB: loop body
LE: loop exit
PB: predicated region body
PF: predicated region fallthrough
CT: control target
= control target key end

     0   :  { %8 = vsyncpa [#allocation3], 0  ;;  %s2179_s0 = inlined_call_operand.hbm [shape: f32[8,128], index: 0, kind: input, shape index: {}]   ;;  %s2180_s1 = inlined_call_operand.hbm [shape: bf16[15,128,128], index: 1, kind: input, shape index: {}]   ;;  %s2181_s2 = inlined_call_operand.hbm [shape: f32[15,1,128], index: 2, kind: input, shape index: {}]   ;;  %s2182_s3 = inlined_call_operand.hbm [shape: f32[8,128], index: 3, kind: output, shape index: {}]  }
   0x1   :  { %9 = vsyncpa [#allocation6], 0  ;;  %s26_s14 = sshll.u32 %s2180_s1, 4  ;;  %s27_s14 = int_to_ptr.hbm [resolvable:$true] %s26_s14 }
   0x2   :  { %10 = vsyncpa [#allocation4], 0  ;;  %s2132_s15 = smov [#allocation5]   ;;  %s16_s19 = sshll.u32 %s2179_s0, 4  ;;  %s17_s19 = int_to_ptr.hbm [resolvable:$true] %s16_s19 }
   0x3   :  { %s28_s16 = sshll.u32 %s2132_s15, 4  ;;  %s2133_s20 = smov 64   ;;  %s29_s16 = int_to_ptr.vmem [resolvable:$true] %s28_s16 }
   0x4   :  { %s2134_s21 = smov 4   ;;  %s2135_s22 = smov [#allocation2]  }
   0x5   :  { %34 = dma.hbm_to_vmem [thread:$0]  %s27_s14, 15360, %s29_s16, [#allocation6], %s2133_s20, %s2133_s20, %s2134_s21  }
   0x6   :  { %s18_s23 = sshll.u32 %s2135_s22, 4  ;;  %s39_s26 = sshll.u32 %s2181_s2, 4  ;;  %s19_s23 = int_to_ptr.vmem [resolvable:$true] %s18_s23  ;;  %s40_s26 = int_to_ptr.hbm [resolvable:$true] %s39_s26 }
   0x7   :  { %21 = dma.hbm_to_vmem [thread:$0]  %s17_s19, 128, %s19_s23, [#allocation3]  }
   0x8   :  { %s2136_s1 = smov [#allocation7]   ;;  %s2137_s28 = smov 16  }
   0x9   :  { %s41_s27 = sshll.u32 %s2136_s1, 4  ;;  %s2138_s29 = smov 1   ;;  %s42_s27 = int_to_ptr.vmem [resolvable:$true] %s41_s27 }
   0xa   :  { %47 = dma.hbm_to_vmem [thread:$0]  %s40_s26, 240, %s42_s27, [#allocation6], %s2137_s28, %s2137_s28, %s2138_s29  }
   0xb   :  { %2126 = dma.done.wait [#allocation3], 128  }
   0xc   :  { %2127 = vsyncadd [#allocation3], 4294967168 }
   0xd   :  { %2128 = dma.done.wait [#allocation6], 15600  }
   0xe   :  { %2129 = vsyncadd [#allocation6], 4294951696  ;;  %v1890_v0 = vld [vmem:[#allocation5 + $0x38] sm:$0xff]  ;;  %v1889_v1 = vld [vmem:[#allocation5 + $0x30] sm:$0xff]  ;;  %s2139_s0 = smov [#allocation8]   ;;  %s1392_s5 = sshll.u32 %s2182_s3, 4  ;;  %s1393_s5 = int_to_ptr.hbm [resolvable:$true] %s1392_s5 }
   0xf   :  { %133 = vmatpush.bf16.msra.mxu0 %v1890_v0  ;;  %v1898_v2 = vld [vmem:[#allocation5 + $0x78] sm:$0xff]  ;;  %v1888_v3 = vld [vmem:[#allocation5 + $0x28] sm:$0xff]  ;;  %v1897_v4 = vld [vmem:[#allocation5 + $0x70] sm:$0xff]  ;;  %s1390_s2 = sshll.u32 %s2139_s0, 4  ;;  %s1391_s2 = int_to_ptr.vmem [resolvable:$true] %s1390_s2 }
  0x10   :  { %220 = vmatpush.bf16.msra.mxu1 %v1898_v2  ;;  %v1896_v5 = vld [vmem:[#allocation5 + $0x68] sm:$0xff]  ;;  %v1887_v6 = vld [vmem:[#allocation5 + $0x20] sm:$0xff]  ;;  %v1886_v8 = vld [vmem:[#allocation5 + $0x18] sm:$0xff] }
  0x11   :  { %v1895_v7 = vld [vmem:[#allocation5 + $0x60] sm:$0xff]  ;;  %v1894_v9 = vld [vmem:[#allocation5 + $0x58] sm:$0xff]  ;;  %v1885_v10 = vld [vmem:[#allocation5 + $0x10] sm:$0xff] }
  0x12   :  { %v1893_v11 = vld [vmem:[#allocation5 + $0x50] sm:$0xff]  ;;  %v1884_v12 = vld [vmem:[#allocation5 + $0x8] sm:$0xff]  ;;  %v1883_v13 = vld [vmem:[#allocation5] sm:$0xff] }
  0x13   :  { %134 = vmatpush.bf16.msra.mxu0 %v1889_v1  ;;  %v60_v14 = vld [vmem:[#allocation2] sm:$0xff]  ;;  %v1892_v16 = vld [vmem:[#allocation5 + $0x48] sm:$0xff]  ;;  %v1891_v17 = vld [vmem:[#allocation5 + $0x40] sm:$0xff] }
  0x14   :  { %221 = vmatpush.bf16.msra.mxu1 %v1897_v4  ;;  %v64_v15 = vpack.c.bf16 %v60_v14, %v60_v14  ;;  %v1906_v18 = vld [vmem:[#allocation5 + $0xb8] sm:$0xff]  ;;  %v1905_v19 = vld [vmem:[#allocation5 + $0xb0] sm:$0xff]  ;;  %v1904_v20 = vld [vmem:[#allocation5 + $0xa8] sm:$0xff] }
  0x15   :  { %308 = vmatpush.bf16.msra.mxu2 %v1906_v18  ;;  %v1903_v21 = vld [vmem:[#allocation5 + $0xa0] sm:$0xff]  ;;  %v1902_v22 = vld [vmem:[#allocation5 + $0x98] sm:$0xff]  ;;  %v1901_v23 = vld [vmem:[#allocation5 + $0x90] sm:$0xff] }
  0x16   :  { %v2011_v24 = vld [vmem:[#allocation7] ss:$0 sm:$0xff]  ;;  %v1900_v31 = vld [vmem:[#allocation5 + $0x88] sm:$0xff]  ;;  %v1914_v33 = vld [vmem:[#allocation5 + $0xf8] sm:$0xff] }
  0x17   :  { %135 = vmatpush.bf16.msra.mxu0 %v1888_v3  ;;  %v1899_v32 = vld [vmem:[#allocation5 + $0x80] sm:$0xff]  ;;  %395 = vmatpush.bf16.msra.mxu3 %v1914_v33  ;;  %v1913_v34 = vld [vmem:[#allocation5 + $0xf0] sm:$0xff]  ;;  %v1912_v35 = vld [vmem:[#allocation5 + $0xe8] sm:$0xff] }
  0x18   :  { %222 = vmatpush.bf16.msra.mxu1 %v1896_v5  ;;  %v1911_v36 = vld [vmem:[#allocation5 + $0xe0] sm:$0xff]  ;;  %v1910_v37 = vld [vmem:[#allocation5 + $0xd8] sm:$0xff]  ;;  %v1909_v38 = vld [vmem:[#allocation5 + $0xd0] sm:$0xff] }
  0x19   :  { %309 = vmatpush.bf16.msra.mxu2 %v1905_v19  ;;  %v2012_v39 = vld [vmem:[#allocation7 + $0x1] ss:$0 sm:$0xff]  ;;  %v1908_v47 = vld [vmem:[#allocation5 + $0xc8] sm:$0xff]  ;;  %v1922_v49 = vld [vmem:[#allocation5 + $0x138] sm:$0xff] }
  0x1a   :  { %v1907_v48 = vld [vmem:[#allocation5 + $0xc0] sm:$0xff]  ;;  %v1921_v50 = vld [vmem:[#allocation5 + $0x130] sm:$0xff]  ;;  %v1920_v51 = vld [vmem:[#allocation5 + $0x128] sm:$0xff] }
  0x1b   :  { %136 = vmatpush.bf16.msra.mxu0 %v1887_v6  ;;  %396 = vmatpush.bf16.msra.mxu3 %v1913_v34  ;;  %v1919_v52 = vld [vmem:[#allocation5 + $0x120] sm:$0xff]  ;;  %v1918_v53 = vld [vmem:[#allocation5 + $0x118] sm:$0xff]  ;;  %v1917_v54 = vld [vmem:[#allocation5 + $0x110] sm:$0xff] }
  0x1c   :  { %223 = vmatpush.bf16.msra.mxu1 %v1895_v7  ;;  %v2013_v55 = vld [vmem:[#allocation7 + $0x2] ss:$0 sm:$0xff]  ;;  %v1916_v62 = vld [vmem:[#allocation5 + $0x108] sm:$0xff]  ;;  %v1930_v0 = vld [vmem:[#allocation5 + $0x178] sm:$0xff] }
  0x1d   :  { %310 = vmatpush.bf16.msra.mxu2 %v1904_v20  ;;  %v1915_v63 = vld [vmem:[#allocation5 + $0x100] sm:$0xff]  ;;  %v1929_v1 = vld [vmem:[#allocation5 + $0x170] sm:$0xff]  ;;  %v1928_v2 = vld [vmem:[#allocation5 + $0x168] sm:$0xff] }
  0x1e   :  { %v1927_v3 = vld [vmem:[#allocation5 + $0x160] sm:$0xff]  ;;  %v1926_v4 = vld [vmem:[#allocation5 + $0x158] sm:$0xff]  ;;  %v1925_v5 = vld [vmem:[#allocation5 + $0x150] sm:$0xff] }
  0x1f   :  { %137 = vmatpush.bf16.msra.mxu0 %v1886_v8  ;;  %397 = vmatpush.bf16.msra.mxu3 %v1912_v35  ;;  %v2014_v6 = vld [vmem:[#allocation7 + $0x3] ss:$0 sm:$0xff]  ;;  %v1936_v18 = vld [vmem:[#allocation5 + $0x1a8] sm:$0xff]  ;;  %v1934_v20 = vld [vmem:[#allocation5 + $0x198] sm:$0xff] }
  0x20   :  { %224 = vmatpush.bf16.msra.mxu1 %v1894_v9  ;;  %v1935_v19 = vld [vmem:[#allocation5 + $0x1a0] sm:$0xff]  ;;  %v1946_v34 = vld [vmem:[#allocation5 + $0x1f8] sm:$0xff]  ;;  %v1945_v35 = vld [vmem:[#allocation5 + $0x1f0] sm:$0xff] }
  0x21   :  { %311 = vmatpush.bf16.msra.mxu2 %v1903_v21  ;;  %v61_v21 = vlaneseq  ;;  %v1931_v33 = vld [vmem:[#allocation5 + $0x180] sm:$0xff] }
  0x23   :  { %138 = vmatpush.bf16.msra.mxu0 %v1885_v10  ;;  %398 = vmatpush.bf16.msra.mxu3 %v1911_v36  ;;  %v1944_v36 = vld [vmem:[#allocation5 + $0x1e8] sm:$0xff] }
  0x24   :  { %225 = vmatpush.bf16.msra.mxu1 %v1893_v11 }
  0x25   :  { %312 = vmatpush.bf16.msra.mxu2 %v1902_v22  ;;  %v1933_v22 = vld [vmem:[#allocation5 + $0x190] sm:$0xff] }
  0x27   :  { %139 = vmatpush.bf16.msra.mxu0 %v1884_v12  ;;  %399 = vmatpush.bf16.msra.mxu3 %v1910_v37  ;;  %v1943_v37 = vld [vmem:[#allocation5 + $0x1e0] sm:$0xff] }
  0x28   :  { %226 = vmatpush.bf16.msra.mxu1 %v1892_v16  ;;  %v1938_v16 = vld [vmem:[#allocation5 + $0x1b8] sm:$0xff] }
  0x29   :  { %313 = vmatpush.bf16.msra.mxu2 %v1901_v23  ;;  %v2015_v23 = vld [vmem:[#allocation7 + $0x4] ss:$0 sm:$0xff] }
  0x2b   :  { %140 = vmatpush.bf16.msra.mxu0 %v1883_v13  ;;  %400 = vmatpush.bf16.msra.mxu3 %v1909_v38  ;;  %v1942_v38 = vld [vmem:[#allocation5 + $0x1d8] sm:$0xff] }
  0x2c   :  { %227 = vmatpush.bf16.msra.mxu1 %v1891_v17  ;;  %v1937_v17 = vld [vmem:[#allocation5 + $0x1b0] sm:$0xff] }
  0x2d   :  { %314 = vmatpush.bf16.msra.mxu2 %v1900_v31 }
  0x2e   :  { %141 = vmatmul.bf16.vlgmr.msra.gmra.mxu0 %v64_v15  ;;  %v1923_v15 = vld [vmem:[#allocation5 + $0x140] sm:$0xff] }
  0x2f   :  { %401 = vmatpush.bf16.msra.mxu3 %v1908_v47  ;;  %483 = vmatpush.bf16.msrb.mxu0 %v1922_v49  ;;  %v1939_v49 = vld [vmem:[#allocation5 + $0x1c0] sm:$0xff] }
  0x30   :  { %571 = vmatpush.bf16.msrb.mxu1 %v1930_v0  ;;  %v1947_v0 = vld [vmem:[#allocation5 + $0x200] sm:$0xff] }
  0x31   :  { %315 = vmatpush.bf16.msra.mxu2 %v1899_v32  ;;  %v1932_v32 = vld [vmem:[#allocation5 + $0x188] sm:$0xff] }
  0x33   :  { %402 = vmatpush.bf16.msra.mxu3 %v1907_v48  ;;  %484 = vmatpush.bf16.msrb.mxu0 %v1921_v50  ;;  %v1940_v48 = vld [vmem:[#allocation5 + $0x1c8] sm:$0xff]  ;;  %v1954_v50 = vld [vmem:[#allocation5 + $0x238] sm:$0xff] }
  0x34   :  { %572 = vmatpush.bf16.msrb.mxu1 %v1929_v1  ;;  %v1962_v1 = vld [vmem:[#allocation5 + $0x278] sm:$0xff] }
  0x35   :  { %659 = vmatpush.bf16.msrb.mxu2 %v1938_v16  ;;  %v1955_v16 = vld [vmem:[#allocation5 + $0x240] sm:$0xff] }
  0x37   :  { %485 = vmatpush.bf16.msrb.mxu0 %v1920_v51  ;;  %746 = vmatpush.bf16.msrb.mxu3 %v1946_v34  ;;  %v1953_v51 = vld [vmem:[#allocation5 + $0x230] sm:$0xff] }
  0x38   :  { %573 = vmatpush.bf16.msrb.mxu1 %v1928_v2  ;;  %v1961_v2 = vld [vmem:[#allocation5 + $0x270] sm:$0xff] }
  0x39   :  { %660 = vmatpush.bf16.msrb.mxu2 %v1937_v17  ;;  %v1970_v17 = vld [vmem:[#allocation5 + $0x2b8] sm:$0xff]  ;;  %v1977_v34 = vld [vmem:[#allocation5 + $0x2f0] sm:$0xff] }
  0x3b   :  { %486 = vmatpush.bf16.msrb.mxu0 %v1919_v52  ;;  %747 = vmatpush.bf16.msrb.mxu3 %v1945_v35  ;;  %v1952_v52 = vld [vmem:[#allocation5 + $0x228] sm:$0xff] }
  0x3c   :  { %574 = vmatpush.bf16.msrb.mxu1 %v1927_v3  ;;  %v1960_v3 = vld [vmem:[#allocation5 + $0x268] sm:$0xff] }
  0x3d   :  { %661 = vmatpush.bf16.msrb.mxu2 %v1936_v18  ;;  %v1969_v18 = vld [vmem:[#allocation5 + $0x2b0] sm:$0xff]  ;;  %v1976_v35 = vld [vmem:[#allocation5 + $0x2e8] sm:$0xff] }
  0x3f   :  { %487 = vmatpush.bf16.msrb.mxu0 %v1918_v53  ;;  %748 = vmatpush.bf16.msrb.mxu3 %v1944_v36  ;;  %v1951_v53 = vld [vmem:[#allocation5 + $0x220] sm:$0xff] }
  0x40   :  { %575 = vmatpush.bf16.msrb.mxu1 %v1926_v4  ;;  %v1959_v4 = vld [vmem:[#allocation5 + $0x260] sm:$0xff] }
  0x41   :  { %662 = vmatpush.bf16.msrb.mxu2 %v1935_v19  ;;  %v1968_v19 = vld [vmem:[#allocation5 + $0x2a8] sm:$0xff]  ;;  %v1975_v36 = vld [vmem:[#allocation5 + $0x2e0] sm:$0xff] }
  0x43   :  { %488 = vmatpush.bf16.msrb.mxu0 %v1917_v54  ;;  %749 = vmatpush.bf16.msrb.mxu3 %v1943_v37  ;;  %v1950_v54 = vld [vmem:[#allocation5 + $0x218] sm:$0xff] }
  0x44   :  { %576 = vmatpush.bf16.msrb.mxu1 %v1925_v5  ;;  %v1958_v5 = vld [vmem:[#allocation5 + $0x258] sm:$0xff] }
  0x45   :  { %663 = vmatpush.bf16.msrb.mxu2 %v1934_v20  ;;  %v1967_v20 = vld [vmem:[#allocation5 + $0x2a0] sm:$0xff]  ;;  %v1974_v37 = vld [vmem:[#allocation5 + $0x2d8] sm:$0xff] }
  0x47   :  { %489 = vmatpush.bf16.msrb.mxu0 %v1916_v62  ;;  %750 = vmatpush.bf16.msrb.mxu3 %v1942_v38  ;;  %v1973_v38 = vld [vmem:[#allocation5 + $0x2d0] sm:$0xff] }
  0x49   :  { %664 = vmatpush.bf16.msrb.mxu2 %v1933_v22  ;;  %v1965_v22 = vld [vmem:[#allocation5 + $0x290] sm:$0xff] }
  0x4b   :  { %490 = vmatpush.bf16.msrb.mxu0 %v1915_v63  ;;  %v1948_v63 = vld [vmem:[#allocation5 + $0x208] sm:$0xff] }
  0x4d   :  { %665 = vmatpush.bf16.msrb.mxu2 %v1932_v32  ;;  %v1963_v32 = vld [vmem:[#allocation5 + $0x280] sm:$0xff] }
  0x4f   :  { %834 = vmatpush.bf16.msra.mxu0 %v1954_v50  ;;  %v1985_v50 = vld [vmem:[#allocation5 + $0x330] sm:$0xff] }
  0x51   :  { %666 = vmatpush.bf16.msrb.mxu2 %v1931_v33  ;;  %v1978_v33 = vld [vmem:[#allocation5 + $0x2f8] sm:$0xff] }
  0x53   :  { %835 = vmatpush.bf16.msra.mxu0 %v1953_v51  ;;  %v1984_v51 = vld [vmem:[#allocation5 + $0x328] sm:$0xff] }
  0x57   :  { %836 = vmatpush.bf16.msra.mxu0 %v1952_v52  ;;  %v1983_v52 = vld [vmem:[#allocation5 + $0x320] sm:$0xff] }
  0x5b   :  { %837 = vmatpush.bf16.msra.mxu0 %v1951_v53  ;;  %v1982_v53 = vld [vmem:[#allocation5 + $0x318] sm:$0xff] }
  0x5f   :  { %838 = vmatpush.bf16.msra.mxu0 %v1950_v54  ;;  %v1981_v54 = vld [vmem:[#allocation5 + $0x310] sm:$0xff] }
  0xab   :  { %v142_v25 = vpop.f32.mrf.mxu0 }
  0xac   :  { %v143_v26 = vadd.f32 %v2011_v24, %v142_v25  ;;  %v2169_v24 = vand.u32 127, %v61_v21  ;;  %v1966_v21 = vld [vmem:[#allocation5 + $0x298] sm:$0xff] }
  0xae   :  { %v147_v27 = vmul.f32 0.05, %v143_v26  ;;  %vm146_vm0 = vcmp.gt.f32.partialorder %v143_v26, 0.0  ;;  %vm63_vm5 = vcmp.lt.s32.totalorder %v2169_v24, 64  ;;  %v2022_v24 = vld [vmem:[#allocation7 + $0xb] ss:$0 sm:$0xff] }
  0xb0   :  { %v148_v28 = vsel %vm146_vm0, %v143_v26, %v147_v27 }
  0xb1   :  { %v149_v29 = vpack.c.bf16 %v148_v28, %v148_v28 }
  0xb3   :  { %v144_v30 = vpop.f32.mrf.mxu0  ;;  %228 = vmatmul.bf16.vlgmr.msra.gmra.mxu1 %v149_v29 }
 0x130   :  { %v229_v40 = vpop.f32.mrf.mxu1 }
 0x131   :  { %v230_v41 = vadd.f32 %v2012_v39, %v229_v40  ;;  %v1941_v39 = vld [vmem:[#allocation5 + $0x1d0] sm:$0xff]  ;;  %v2016_v40 = vld [vmem:[#allocation7 + $0x5] ss:$0 sm:$0xff] }
 0x132   :  { %751 = vmatpush.bf16.msrb.mxu3 %v1941_v39  ;;  %v2020_v39 = vld [vmem:[#allocation7 + $0x9] ss:$0 sm:$0xff] }
 0x133   :  { %v233_v42 = vadd.f32 %v230_v41, %v60_v14  ;;  %v1924_v14 = vld [vmem:[#allocation5 + $0x148] sm:$0xff] }
 0x134   :  { %577 = vmatpush.bf16.msrb.mxu1 %v1924_v14 }
 0x135   :  { %vm234_vm1 = vcmp.gt.f32.partialorder %v233_v42, 0.0  ;;  %v235_v43 = vmul.f32 0.05, %v233_v42 }
 0x136   :  { %752 = vmatpush.bf16.msrb.mxu3 %v1940_v48  ;;  %v1971_v48 = vld [vmem:[#allocation5 + $0x2c0] sm:$0xff] }
 0x137   :  { %v236_v44 = vsel %vm234_vm1, %v233_v42, %v235_v43 }
 0x138   :  { %v231_v45 = vpop.f32.mrf.mxu1  ;;  %v237_v46 = vpack.c.bf16 %v236_v44, %v236_v44  ;;  %578 = vmatpush.bf16.msrb.mxu1 %v1923_v15  ;;  %v1956_v15 = vld [vmem:[#allocation5 + $0x248] sm:$0xff] }
 0x13a   :  { %316 = vmatmul.bf16.vlgmr.msra.gmra.mxu2 %v237_v46  ;;  %753 = vmatpush.bf16.msrb.mxu3 %v1939_v49  ;;  %v1986_v49 = vld [vmem:[#allocation5 + $0x338] sm:$0xff] }
 0x13b   :  { %1009 = vmatpush.bf16.msra.mxu2 %v1970_v17  ;;  %v2001_v17 = vld [vmem:[#allocation5 + $0x3b0] sm:$0xff] }
 0x13c   :  { %921 = vmatpush.bf16.msra.mxu1 %v1962_v1  ;;  %v1994_v1 = vld [vmem:[#allocation5 + $0x378] sm:$0xff] }
 0x13f   :  { %1010 = vmatpush.bf16.msra.mxu2 %v1969_v18  ;;  %v2000_v18 = vld [vmem:[#allocation5 + $0x3a8] sm:$0xff] }
 0x140   :  { %922 = vmatpush.bf16.msra.mxu1 %v1961_v2  ;;  %v1993_v2 = vld [vmem:[#allocation5 + $0x370] sm:$0xff] }
 0x143   :  { %1011 = vmatpush.bf16.msra.mxu2 %v1968_v19  ;;  %v1999_v19 = vld [vmem:[#allocation5 + $0x3a0] sm:$0xff] }
 0x144   :  { %923 = vmatpush.bf16.msra.mxu1 %v1960_v3  ;;  %v1992_v3 = vld [vmem:[#allocation5 + $0x368] sm:$0xff] }
 0x147   :  { %1012 = vmatpush.bf16.msra.mxu2 %v1967_v20  ;;  %v1998_v20 = vld [vmem:[#allocation5 + $0x398] sm:$0xff] }
 0x148   :  { %924 = vmatpush.bf16.msra.mxu1 %v1959_v4  ;;  %v1991_v4 = vld [vmem:[#allocation5 + $0x360] sm:$0xff] }
 0x14b   :  { %1013 = vmatpush.bf16.msra.mxu2 %v1966_v21  ;;  %v1997_v21 = vld [vmem:[#allocation5 + $0x390] sm:$0xff] }
 0x14c   :  { %925 = vmatpush.bf16.msra.mxu1 %v1958_v5  ;;  %v1990_v5 = vld [vmem:[#allocation5 + $0x358] sm:$0xff] }
 0x14f   :  { %1014 = vmatpush.bf16.msra.mxu2 %v1965_v22  ;;  %v2023_v22 = vld [vmem:[#allocation7 + $0xc] ss:$0 sm:$0xff] }
 0x1bd   :  { %v317_v56 = vpop.f32.mrf.mxu2 }
 0x1be   :  { %v318_v57 = vadd.f32 %v2013_v55, %v317_v56  ;;  %v1949_v55 = vld [vmem:[#allocation5 + $0x210] sm:$0xff]  ;;  %v2017_v56 = vld [vmem:[#allocation7 + $0x6] ss:$0 sm:$0xff] }
 0x1bf   :  { %839 = vmatpush.bf16.msra.mxu0 %v1949_v55  ;;  %v2021_v55 = vld [vmem:[#allocation7 + $0xa] ss:$0 sm:$0xff] }
 0x1c0   :  { %v322_v58 = vmul.f32 0.05, %v318_v57  ;;  %vm321_vm2 = vcmp.gt.f32.partialorder %v318_v57, 0.0 }
 0x1c2   :  { %v323_v59 = vsel %vm321_vm2, %v318_v57, %v322_v58 }
 0x1c3   :  { %v324_v60 = vpack.c.bf16 %v323_v59, %v323_v59  ;;  %840 = vmatpush.bf16.msra.mxu0 %v1948_v63  ;;  %v1980_v63 = vld [vmem:[#allocation5 + $0x308] sm:$0xff] }
 0x1c5   :  { %v319_v61 = vpop.f32.mrf.mxu2  ;;  %403 = vmatmul.bf16.vlgmr.msra.gmra.mxu3 %v324_v60 }
 0x1c6   :  { %1097 = vmatpush.bf16.msra.mxu3 %v1978_v33 }
 0x1c7   :  { %841 = vmatpush.bf16.msra.mxu0 %v1947_v0  ;;  %v1979_v0 = vld [vmem:[#allocation5 + $0x300] sm:$0xff] }
 0x1ca   :  { %1098 = vmatpush.bf16.msra.mxu3 %v1977_v34 }
 0x1ce   :  { %1099 = vmatpush.bf16.msra.mxu3 %v1976_v35 }
 0x1d2   :  { %1100 = vmatpush.bf16.msra.mxu3 %v1975_v36 }
 0x1d6   :  { %1101 = vmatpush.bf16.msra.mxu3 %v1974_v37 }
 0x1da   :  { %1102 = vmatpush.bf16.msra.mxu3 %v1973_v38 }
 0x248   :  { %v404_v7 = vpop.f32.mrf.mxu3 }
 0x249   :  { %v405_v8 = vadd.f32 %v2014_v6, %v404_v7  ;;  %v1957_v6 = vld [vmem:[#allocation5 + $0x250] sm:$0xff]  ;;  %v2018_v7 = vld [vmem:[#allocation7 + $0x7] ss:$0 sm:$0xff] }
 0x24a   :  { %926 = vmatpush.bf16.msra.mxu1 %v1957_v6  ;;  %v1989_v6 = vld [vmem:[#allocation5 + $0x350] sm:$0xff] }
 0x24b   :  { %v408_v9 = vadd.f32 %v405_v8, %v236_v44 }
 0x24d   :  { %v410_v10 = vmul.f32 0.05, %v408_v9  ;;  %vm409_vm3 = vcmp.gt.f32.partialorder %v408_v9, 0.0 }
 0x24e   :  { %927 = vmatpush.bf16.msra.mxu1 %v1956_v15  ;;  %v1987_v15 = vld [vmem:[#allocation5 + $0x340] sm:$0xff] }
 0x24f   :  { %v411_v11 = vsel %vm409_vm3, %v408_v9, %v410_v10 }
 0x250   :  { %v406_v12 = vpop.f32.mrf.mxu3  ;;  %v412_v13 = vpack.c.bf16 %v411_v11, %v411_v11 }
 0x252   :  { %491 = vmatmul.bf16.vlgmr.msrb.gmra.mxu0 %v412_v13  ;;  %928 = vmatpush.bf16.msra.mxu1 %v1955_v16  ;;  %v2002_v16 = vld [vmem:[#allocation5 + $0x3b8] sm:$0xff] }
 0x253   :  { %1185 = vmatpush.bf16.msrb.mxu0 %v1986_v49 }
 0x257   :  { %1186 = vmatpush.bf16.msrb.mxu0 %v1985_v50 }
 0x25b   :  { %1187 = vmatpush.bf16.msrb.mxu0 %v1984_v51 }
 0x25f   :  { %1188 = vmatpush.bf16.msrb.mxu0 %v1983_v52 }
 0x263   :  { %1189 = vmatpush.bf16.msrb.mxu0 %v1982_v53 }
 0x267   :  { %1190 = vmatpush.bf16.msrb.mxu0 %v1981_v54 }
 0x26b   :  { %1191 = vmatpush.bf16.msrb.mxu0 %v1980_v63 }
 0x26f   :  { %1192 = vmatpush.bf16.msrb.mxu0 %v1979_v0 }
 0x2cf   :  { %v492_v25 = vpop.f32.mrf.mxu0 }
 0x2d0   :  { %v493_v26 = vadd.f32 %v2015_v23, %v492_v25  ;;  %v2019_v23 = vld [vmem:[#allocation7 + $0x8] ss:$0 sm:$0xff] }
 0x2d2   :  { %vm496_vm4 = vcmp.gt.f32.partialorder %v493_v26, 0.0  ;;  %v497_v27 = vmul.f32 0.05, %v493_v26 }
 0x2d4   :  { %v498_v28 = vsel %vm496_vm4, %v493_v26, %v497_v27 }
 0x2d5   :  { %v499_v29 = vsel %vm63_vm5, %v498_v28, %v493_v26 }
 0x2d6   :  { %v500_v30 = vpack.c.bf16 %v499_v29, %v499_v29 }
 0x2d7   :  { %v494_v31 = vpop.f32.mrf.mxu0 }
 0x2d8   :  { %579 = vmatmul.bf16.vlgmr.msrb.gmra.mxu1 %v500_v30  ;;  %v1964_v31 = vld [vmem:[#allocation5 + $0x288] sm:$0xff] }
 0x2d9   :  { %1015 = vmatpush.bf16.msra.mxu2 %v1964_v31  ;;  %1272 = vmatpush.bf16.msrb.mxu1 %v1994_v1  ;;  %v1995_v31 = vld [vmem:[#allocation5 + $0x380] sm:$0xff] }
 0x2dd   :  { %1016 = vmatpush.bf16.msra.mxu2 %v1963_v32  ;;  %1273 = vmatpush.bf16.msrb.mxu1 %v1993_v2  ;;  %v2024_v32 = vld [vmem:[#allocation7 + $0xd] ss:$0 sm:$0xff] }
 0x2e1   :  { %1274 = vmatpush.bf16.msrb.mxu1 %v1992_v3 }
 0x2e5   :  { %1275 = vmatpush.bf16.msrb.mxu1 %v1991_v4 }
 0x2e9   :  { %1276 = vmatpush.bf16.msrb.mxu1 %v1990_v5 }
 0x2ed   :  { %1277 = vmatpush.bf16.msrb.mxu1 %v1989_v6 }
 0x355   :  { %v580_v41 = vpop.f32.mrf.mxu1 }
 0x356   :  { %v581_v42 = vadd.f32 %v2016_v40, %v580_v41 }
 0x358   :  { %v584_v43 = vadd.f32 %v581_v42, %v499_v29 }
 0x35a   :  { %vm585_vm6 = vcmp.gt.f32.partialorder %v584_v43, 0.0  ;;  %v586_v44 = vmul.f32 0.05, %v584_v43 }
 0x35c   :  { %v587_v45 = vsel %vm585_vm6, %v584_v43, %v586_v44 }
 0x35d   :  { %v582_v46 = vpop.f32.mrf.mxu1  ;;  %v588_v47 = vpack.c.bf16 %v587_v45, %v587_v45 }
 0x35f   :  { %667 = vmatmul.bf16.vlgmr.msrb.gmra.mxu2 %v588_v47  ;;  %v1972_v47 = vld [vmem:[#allocation5 + $0x2c8] sm:$0xff] }
 0x360   :  { %1103 = vmatpush.bf16.msra.mxu3 %v1972_v47  ;;  %1359 = vmatpush.bf16.msrb.mxu2 %v2002_v16 }
 0x364   :  { %1104 = vmatpush.bf16.msra.mxu3 %v1971_v48  ;;  %1360 = vmatpush.bf16.msrb.mxu2 %v2001_v17 }
 0x368   :  { %1361 = vmatpush.bf16.msrb.mxu2 %v2000_v18 }
 0x36c   :  { %1362 = vmatpush.bf16.msrb.mxu2 %v1999_v19 }
 0x370   :  { %1363 = vmatpush.bf16.msrb.mxu2 %v1998_v20 }
 0x374   :  { %1364 = vmatpush.bf16.msrb.mxu2 %v1997_v21 }
 0x3e2   :  { %v668_v57 = vpop.f32.mrf.mxu2 }
 0x3e3   :  { %v669_v58 = vadd.f32 %v2017_v56, %v668_v57 }
 0x3e5   :  { %vm672_vm7 = vcmp.gt.f32.partialorder %v669_v58, 0.0  ;;  %v673_v59 = vmul.f32 0.05, %v669_v58 }
 0x3e7   :  { %v674_v60 = vsel %vm672_vm7, %v669_v58, %v673_v59 }
 0x3e8   :  { %v675_v61 = vpack.c.bf16 %v674_v60, %v674_v60 }
 0x3ea   :  { %v670_v62 = vpop.f32.mrf.mxu2  ;;  %754 = vmatmul.bf16.vlgmr.msrb.gmra.mxu3 %v675_v61 }
 0x46d   :  { %v755_v8 = vpop.f32.mrf.mxu3 }
 0x46e   :  { %v756_v9 = vadd.f32 %v2018_v7, %v755_v8 }
 0x470   :  { %v759_v10 = vadd.f32 %v756_v9, %v587_v45 }
 0x472   :  { %vm760_vm8 = vcmp.gt.f32.partialorder %v759_v10, 0.0  ;;  %v761_v11 = vmul.f32 0.05, %v759_v10 }
 0x474   :  { %v762_v12 = vsel %vm760_vm8, %v759_v10, %v761_v11 }
 0x475   :  { %v757_v13 = vpop.f32.mrf.mxu3  ;;  %v763_v14 = vpack.c.bf16 %v762_v12, %v762_v12 }
 0x477   :  { %842 = vmatmul.bf16.vlgmr.msra.gmra.mxu0 %v763_v14  ;;  %v1988_v14 = vld [vmem:[#allocation5 + $0x348] sm:$0xff] }
 0x478   :  { %1278 = vmatpush.bf16.msrb.mxu1 %v1988_v14 }
 0x47c   :  { %1279 = vmatpush.bf16.msrb.mxu1 %v1987_v15 }
 0x4f4   :  { %v843_v25 = vpop.f32.mrf.mxu0 }
 0x4f5   :  { %v844_v26 = vadd.f32 %v2019_v23, %v843_v25 }
 0x4f7   :  { %vm847_vm9 = vcmp.gt.f32.partialorder %v844_v26, 0.0  ;;  %v848_v27 = vmul.f32 0.05, %v844_v26 }
 0x4f9   :  { %v849_v28 = vsel %vm847_vm9, %v844_v26, %v848_v27 }
 0x4fa   :  { %v850_v29 = vpack.c.bf16 %v849_v28, %v849_v28 }
 0x4fc   :  { %v845_v30 = vpop.f32.mrf.mxu0  ;;  %929 = vmatmul.bf16.vlgmr.msra.gmra.mxu1 %v850_v29 }
 0x4fd   :  { %v1996_v30 = vld [vmem:[#allocation5 + $0x388] sm:$0xff] }
 0x4fe   :  { %1365 = vmatpush.bf16.msrb.mxu2 %v1996_v30 }
 0x502   :  { %1366 = vmatpush.bf16.msrb.mxu2 %v1995_v31 }
 0x579   :  { %v930_v40 = vpop.f32.mrf.mxu1 }
 0x57a   :  { %v931_v41 = vadd.f32 %v2020_v39, %v930_v40  ;;  %v2025_v39 = vld [vmem:[#allocation7 + $0xe] ss:$0 sm:$0xff] }
 0x57c   :  { %v934_v42 = vadd.f32 %v931_v41, %v762_v12 }
 0x57e   :  { %vm935_vm10 = vcmp.gt.f32.partialorder %v934_v42, 0.0  ;;  %v936_v43 = vmul.f32 0.05, %v934_v42 }
 0x580   :  { %v937_v44 = vsel %vm935_vm10, %v934_v42, %v936_v43 }
 0x581   :  { %v938_v45 = vpack.c.bf16 %v937_v44, %v937_v44  ;;  %v932_v46 = vpop.f32.mrf.mxu1 }
 0x583   :  { %1017 = vmatmul.bf16.vlgmr.msra.gmra.mxu2 %v938_v45 }
 0x606   :  { %v1018_v56 = vpop.f32.mrf.mxu2 }
 0x607   :  { %v1019_v57 = vadd.f32 %v2021_v55, %v1018_v56 }
 0x609   :  { %vm1022_vm11 = vcmp.gt.f32.partialorder %v1019_v57, 0.0  ;;  %v1023_v58 = vmul.f32 0.05, %v1019_v57 }
 0x60b   :  { %v1024_v59 = vsel %vm1022_vm11, %v1019_v57, %v1023_v58 }
 0x60c   :  { %v1025_v60 = vsel %vm63_vm5, %v1024_v59, %v1019_v57 }
 0x60d   :  { %v1026_v61 = vpack.c.bf16 %v1025_v60, %v1025_v60 }
 0x60e   :  { %v1020_v62 = vpop.f32.mrf.mxu2 }
 0x60f   :  { %1105 = vmatmul.bf16.vlgmr.msra.gmra.mxu3 %v1026_v61 }
 0x692   :  { %v1106_v7 = vpop.f32.mrf.mxu3 }
 0x693   :  { %v1107_v8 = vadd.f32 %v2022_v24, %v1106_v7 }
 0x695   :  { %v1110_v9 = vadd.f32 %v1107_v8, %v1025_v60 }
 0x697   :  { %vm1111_vm12 = vcmp.gt.f32.partialorder %v1110_v9, 0.0  ;;  %v1112_v10 = vmul.f32 0.05, %v1110_v9 }
 0x699   :  { %v1113_v11 = vsel %vm1111_vm12, %v1110_v9, %v1112_v10 }
 0x69a   :  { %v1114_v12 = vpack.c.bf16 %v1113_v11, %v1113_v11  ;;  %v1108_v13 = vpop.f32.mrf.mxu3 }
 0x69c   :  { %1193 = vmatmul.bf16.vlgmr.msrb.gmra.mxu0 %v1114_v12 }
 0x719   :  { %v1194_v23 = vpop.f32.mrf.mxu0 }
 0x71a   :  { %v1195_v25 = vadd.f32 %v2023_v22, %v1194_v23 }
 0x71c   :  { %vm1198_vm13 = vcmp.gt.f32.partialorder %v1195_v25, 0.0  ;;  %v1199_v26 = vmul.f32 0.05, %v1195_v25 }
 0x71e   :  { %v1200_v27 = vsel %vm1198_vm13, %v1195_v25, %v1199_v26 }
 0x71f   :  { %v1201_v28 = vpack.c.bf16 %v1200_v27, %v1200_v27 }
 0x721   :  { %v1196_v29 = vpop.f32.mrf.mxu0  ;;  %1280 = vmatmul.bf16.vlgmr.msrb.gmra.mxu1 %v1201_v28 }
 0x79e   :  { %v1281_v33 = vpop.f32.mrf.mxu1 }
 0x79f   :  { %v1282_v34 = vadd.f32 %v2024_v32, %v1281_v33 }
 0x7a1   :  { %vm1285_vm14 = vcmp.gt.f32.partialorder %v1282_v34, 0.0  ;;  %v1286_v35 = vmul.f32 0.05, %v1282_v34 }
 0x7a3   :  { %v1287_v36 = vsel %vm1285_vm14, %v1282_v34, %v1286_v35 }
 0x7a4   :  { %v1288_v37 = vpack.c.bf16 %v1287_v36, %v1287_v36 }
 0x7a6   :  { %v1283_v38 = vpop.f32.mrf.mxu1  ;;  %1367 = vmatmul.bf16.vlgmr.msrb.gmra.mxu2 %v1288_v37 }
 0x829   :  { %v1368_v40 = vpop.f32.mrf.mxu2 }
 0x82a   :  { %v1369_v41 = vadd.f32 %v2025_v39, %v1368_v40 }
 0x82c   :  { %1372 = vmax.xlane.f32.xlu0 %v1369_v41 }
 0x831   :  { %v1370_v42 = vpop.f32.mrf.mxu2 }
 0x89f   :  { %v1373_v43 = vpop.xlane.xlu0 %1372 }
 0x8a0   :  { %v1374_v44 = vsub.f32 %v1369_v41, %v1373_v43 }
 0x8a2   :  { %v1375_v45 = vmul.f32 1.442695, %v1374_v44 }
 0x8a4   :  { %2026 = vpow2.f32 %v1375_v45 }
 0x8aa   :  { %v2027_v46 = vpop.eup %2026 }
 0x8ab   :  { %1377 = vadd.xlane.f32.xlu0 %v2027_v46 }
 0x91e   :  { %v1378_v47 = vpop.xlane.xlu0 %1377 }
 0x91f   :  { %2028 = vrcp.f32 %v1378_v47 }
 0x925   :  { %v2029_v48 = vpop.eup %2028 }
 0x926   :  { %v1380_v49 = vmul.f32 %v2029_v48, %v1378_v47 }
 0x928   :  { %v1381_v50 = vsub.f32 2.0, %v1380_v49 }
 0x92a   :  { %v1382_v51 = vmul.f32 %v2029_v48, %v1381_v50 }
 0x92c   :  { %v1383_v52 = vmul.f32 %v2027_v46, %v1382_v51 }
 0x92e   :  { %1384 = vst [vmem:[#allocation8] sm:$0xff] %v1383_v52 }
 0x92f   :  { %1395 = dma.vmem_to_hbm [thread:$0]  %s1391_s2, 128, %s1393_s5, [#allocation4]  }
 0x930   :  { %2130 = dma.done.wait [#allocation4], 128  }
 0x931   :  { %2131 = vsyncadd [#allocation4], 4294967168 }
 0x932   :  { %1400 = vsyncpa [#allocation3], 1 }
 0x933   :  { %1401 = vsyncpa [#allocation6], 1 }
 0x934   :  { %1402 = vsyncpa [#allocation4], 1 }

</bundles_post_ra>
